<compile_context>
chip_gen: v7x
topology: tpu7x:2x2x1
jax: 0.10.0
libtpu: 0.0.40
codegen_flags: <defaults>
</compile_context>

<pallas_src>
import functools

import jax
import jax.numpy as jnp
from jax.experimental import pallas as pl
from jax.experimental.pallas import tpu as pltpu


def _round_up(x, m):
    return ((x + m - 1) // m) * m


# ---------------------------------------------------------------------------
# Kernel
# ---------------------------------------------------------------------------
def _mlp_kernel(num_stage, *refs):
    """Fused forward pass for one batch tile.

    refs = (x, w1, shifts, wa_0, wb_0, ..., wa_{S-1}, wb_{S-1}, w2, b2, out)

    Weights are bf16 with the eval-mode BatchNorm scale pre-folded into the
    columns; `shifts` holds the per-layer (bias - mean)*scale + beta rows in
    f32. Every matmul accumulates in f32 on the MXU.
    """
    x_ref, w1_ref, shifts_ref = refs[0], refs[1], refs[2]
    stage_refs = refs[3:3 + 2 * num_stage]
    w2_ref, b2_ref, out_ref = refs[3 + 2 * num_stage:]

    # w1 -> (folded BN1) -> ReLU   (dropout = identity in eval mode)
    y = jnp.dot(x_ref[...], w1_ref[...], preferred_element_type=jnp.float32)
    y = jnp.maximum(y + shifts_ref[0:1, :], 0.0)

    # Residual "Linear" stages.
    for s in range(num_stage):
        wa_ref, wb_ref = stage_refs[2 * s], stage_refs[2 * s + 1]
        h = jnp.dot(y.astype(wa_ref.dtype), wa_ref[...],
                    preferred_element_type=jnp.float32)
        h = jnp.maximum(h + shifts_ref[2 * s + 1:2 * s + 2, :], 0.0)
        h = jnp.dot(h.astype(wb_ref.dtype), wb_ref[...],
                    preferred_element_type=jnp.float32)
        h = jnp.maximum(h + shifts_ref[2 * s + 2:2 * s + 3, :], 0.0)
        y = y + h

    # Final projection (plain Linear, no BN/ReLU); output width is lane-padded.
    out = jnp.dot(y.astype(w2_ref.dtype), w2_ref[...],
                  preferred_element_type=jnp.float32)
    out_ref[...] = (out + b2_ref[...]).astype(out_ref.dtype)


# ---------------------------------------------------------------------------
# Wrapper
# ---------------------------------------------------------------------------
def linear_model_multihyp_forward(x, prep, *, tile_b=None,
                                  single_buffer_weights=True):
    """x: [B, inputDim] float. Returns [B, outputDim * num_modes] f32."""
    num_stage = prep["num_stage"]
    d_in, d_out = prep["d_in"], prep["d_out"]
    w1, shifts, w2, b2 = prep["w1"], prep["shifts"], prep["w2"], prep["b2"]
    stage_ws = prep["stage_ws"]                  # [wa0, wb0, wa1, wb1, ...]
    d_in_pad, d_hid = w1.shape
    d_out_pad = w2.shape[1]

    B = x.shape[0]
    assert x.shape[1] == d_in
    if tile_b is None:
        # Whole (sublane-rounded) batch in one grid step when small; otherwise
        # 256-row tiles to fill the MXU and amortize per-step overhead.
        tile_b = min(_round_up(B, 8), 256)
    B_pad = _round_up(B, tile_b)

    # Pad batch / input features, cast activations to bf16 (f32 MXU accum).
    x_pad = jnp.pad(x.astype(jnp.float32),
                    ((0, B_pad - B), (0, d_in_pad - d_in))).astype(jnp.bfloat16)

    weight_args = [w1, shifts] + list(stage_ws) + [w2, b2]

    # Size the VMEM limit from the actual footprint instead of a blanket 64MiB.
    w_bytes = sum(int(a.size) * a.dtype.itemsize for a in weight_args)
    io_bytes = tile_b * d_in_pad * 2 + tile_b * d_out_pad * 4
    wt_bufs = 1 if single_buffer_weights else 2
    need = wt_bufs * w_bytes + 2 * io_bytes
    vmem_limit = max(8 << 20, min(2 * need + (4 << 20), 48 << 20))

    kernel = functools.partial(_mlp_kernel, num_stage)
    grid = (B_pad // tile_b,)

    def run(weight_pipeline_mode):
        def const_spec(a):
            nd = a.ndim
            kwargs = {}
            if weight_pipeline_mode is not None:
                kwargs["pipeline_mode"] = weight_pipeline_mode
            return pl.BlockSpec(a.shape, lambda i, _nd=nd: (0,) * _nd, **kwargs)

        in_specs = [pl.BlockSpec((tile_b, d_in_pad), lambda i: (i, 0))]
        in_specs += [const_spec(a) for a in weight_args]
        out_spec = pl.BlockSpec((tile_b, d_out_pad), lambda i: (i, 0))

        return pl.pallas_call(
            kernel,
            out_shape=jax.ShapeDtypeStruct((B_pad, d_out_pad), jnp.float32),
            grid_spec=pltpu.PrefetchScalarGridSpec(
                num_scalar_prefetch=0,
                grid=grid,
                in_specs=in_specs,
                out_specs=out_spec,
            ),
            compiler_params=pltpu.CompilerParams(
                dimension_semantics=("parallel",),
                vmem_limit_bytes=vmem_limit,
            ),
        )(x_pad, *weight_args)

    if single_buffer_weights and hasattr(pl, "Buffered"):
        try:
            # Constant-index weights: single-buffer to halve resident VMEM.
            out_pad = jax.block_until_ready(run(pl.Buffered(1)))
        except Exception:
            # pipeline_mode / Buffered(1) not supported on this jax version.
            out_pad = run(None)
    else:
        out_pad = run(None)

    return out_pad[:B, :d_out]


# ---------------------------------------------------------------------------
# Deterministic parameter construction (synthetic, matches module shapes)
# ---------------------------------------------------------------------------
def make_raw_params(key, input_dim, linear_size, output_dim, num_modes,
                    num_stage):
    """Raw PyTorch-style params: Linear as W[in,out] + b, plus BN stats."""
    def linear(k, d_in, d_out):
        kw, kb = jax.random.split(k)
        bound = 1.0 / jnp.sqrt(jnp.float32(d_in))
        return dict(
            W=jax.random.uniform(kw, (d_in, d_out), jnp.float32, -bound, bound),
            b=jax.random.uniform(kb, (d_out,), jnp.float32, -bound, bound))

    def bn(k, d):
        kg, kb, km, kv = jax.random.split(k, 4)
        return dict(
            gamma=1.0 + 0.1 * jax.random.normal(kg, (d,), jnp.float32),
            beta=0.1 * jax.random.normal(kb, (d,), jnp.float32),
            mean=0.1 * jax.random.normal(km, (d,), jnp.float32),
            var=jnp.abs(1.0 + 0.1 * jax.random.normal(kv, (d,), jnp.float32)))

    out_size = output_dim * num_modes
    keys = jax.random.split(key, 4 * num_stage + 3)
    raw = dict(num_stage=num_stage)
    raw["w1"] = dict(**linear(keys[0], input_dim, linear_size),
                     **bn(keys[1], linear_size))
    stages = []
    for s in range(num_stage):
        k = keys[2 + 4 * s: 6 + 4 * s]
        stages.append(dict(
            a=dict(**linear(k[0], linear_size, linear_size),
                   **bn(k[1], linear_size)),
            b=dict(**linear(k[2], linear_size, linear_size),
                   **bn(k[3], linear_size))))
    raw["stages"] = stages
    raw["w2"] = linear(keys[-1], linear_size, out_size)
    return raw


def prepare_kernel_params(raw, *, eps=1e-5, weight_dtype=jnp.bfloat16):
    """Fold eval-mode BN into the Linear weights, pad to lane-friendly shapes,
    cast weights to bf16 and concatenate the per-layer shifts."""
    num_stage = raw["num_stage"]

    def fold(p):
        scale = p["gamma"] / jnp.sqrt(p["var"] + eps)             # [d_out]
        w = (p["W"] * scale[None, :]).astype(weight_dtype)        # [d_in, d_out]
        shift = (p["b"] - p["mean"]) * scale + p["beta"]          # [d_out] f32
        return w, shift

    d_in, d_hid = raw["w1"]["W"].shape
    d_out = raw["w2"]["W"].shape[1]
    d_in_pad = _round_up(d_in, 128)
    d_out_pad = _round_up(d_out, 128)

    w1, t1 = fold(raw["w1"])
    w1 = jnp.pad(w1, ((0, d_in_pad - d_in), (0, 0)))

    shifts = [t1]
    stage_ws = []
    for s in range(num_stage):
        wa, ta = fold(raw["stages"][s]["a"])
        wb, tb = fold(raw["stages"][s]["b"])
        stage_ws += [wa, wb]
        shifts += [ta, tb]
    shifts = jnp.stack(shifts, axis=0).astype(jnp.float32)        # [1+2S, d_hid]

    w2 = jnp.pad(raw["w2"]["W"].astype(weight_dtype),
                 ((0, 0), (0, d_out_pad - d_out)))
    b2 = jnp.pad(raw["w2"]["b"].astype(jnp.float32),
                 (0, d_out_pad - d_out)).reshape(1, d_out_pad)

    return dict(num_stage=num_stage, d_in=d_in, d_out=d_out,
                w1=w1, shifts=shifts, stage_ws=stage_ws, w2=w2, b2=b2)


def reference_forward(x, raw, *, eps=1e-5):
    """Pure-JAX f32 reference: eval-mode forward of the PyTorch module."""
    def lin_bn_relu(h, p):
        h = h @ p["W"] + p["b"]
        h = (h - p["mean"]) / jnp.sqrt(p["var"] + eps) * p["gamma"] + p["beta"]
        return jnp.maximum(h, 0.0)

    y = lin_bn_relu(x, raw["w1"])
    for s in range(raw["num_stage"]):
        st = raw["stages"][s]
        h = lin_bn_relu(y, st["a"])
        h = lin_bn_relu(h, st["b"])
        y = y + h
    return y @ raw["w2"]["W"] + raw["w2"]["b"]


# ---------------------------------------------------------------------------
if __name__ == "__main__":
    # Small config consistent with the module (reduced hidden width for demo).
    INPUT_DIM = 48
    LINEAR_SIZE = 256       # module default is 1024; reduced for a small demo
    OUTPUT_DIM = 85
    NUM_MODES = 5           # output width = 85 * 5 = 425 (padded to 512)
    NUM_STAGE = 2
    BATCH = 16

    key = jax.random.PRNGKey(0)
    kx, kp = jax.random.split(key)
    x = jax.random.normal(kx, (BATCH, INPUT_DIM), jnp.float32)
    raw = make_raw_params(kp, INPUT_DIM, LINEAR_SIZE, OUTPUT_DIM,
                          NUM_MODES, NUM_STAGE)
    prep = prepare_kernel_params(raw)

    out = linear_model_multihyp_forward(x, prep)
    out = jax.block_until_ready(out)

    ref = reference_forward(x, raw)
    assert out.shape == (BATCH, OUTPUT_DIM * NUM_MODES)
    # bf16 weights/activations (f32 accumulation) vs an all-f32 reference.
    assert jnp.allclose(out, ref, atol=5e-2, rtol=5e-2), (
        "mismatch vs reference: max|diff|="
        f"{float(jnp.max(jnp.abs(out - ref)))}")

    print("KERNEL_OK")
</pallas_src>

<mosaic_0001>
module attributes {stable_mosaic.version = 11 : i64} {
  func.func @_mlp_kernel(%arg0: i32, %arg1: memref<16x128xbf16, #tpu.memory_space<vmem>>, %arg2: memref<128x256xbf16, #tpu.memory_space<vmem>>, %arg3: memref<5x256xf32, #tpu.memory_space<vmem>>, %arg4: memref<256x256xbf16, #tpu.memory_space<vmem>>, %arg5: memref<256x256xbf16, #tpu.memory_space<vmem>>, %arg6: memref<256x256xbf16, #tpu.memory_space<vmem>>, %arg7: memref<256x256xbf16, #tpu.memory_space<vmem>>, %arg8: memref<256x512xbf16, #tpu.memory_space<vmem>>, %arg9: memref<1x512xf32, #tpu.memory_space<vmem>>, %arg10: memref<16x512xf32, #tpu.memory_space<vmem>>) attributes {dimension_semantics = [#tpu.dimension_semantics<parallel>], iteration_bounds = array<i64: 1>, scalar_prefetch = 0 : i64, scratch_operands = 0 : i64, tpu.core_type = #tpu.core_type<tc>, window_params = [{transform_indices = @transform_0, window_bounds = array<i64: 16, 128>}, {pipeline_mode = #tpu.pipeline_mode<synchronous>, transform_indices = @transform_1, window_bounds = array<i64: 128, 256>}, {pipeline_mode = #tpu.pipeline_mode<synchronous>, transform_indices = @transform_2, window_bounds = array<i64: 5, 256>}, {pipeline_mode = #tpu.pipeline_mode<synchronous>, transform_indices = @transform_3, window_bounds = array<i64: 256, 256>}, {pipeline_mode = #tpu.pipeline_mode<synchronous>, transform_indices = @transform_4, window_bounds = array<i64: 256, 256>}, {pipeline_mode = #tpu.pipeline_mode<synchronous>, transform_indices = @transform_5, window_bounds = array<i64: 256, 256>}, {pipeline_mode = #tpu.pipeline_mode<synchronous>, transform_indices = @transform_6, window_bounds = array<i64: 256, 256>}, {pipeline_mode = #tpu.pipeline_mode<synchronous>, transform_indices = @transform_7, window_bounds = array<i64: 256, 512>}, {pipeline_mode = #tpu.pipeline_mode<synchronous>, transform_indices = @transform_8, window_bounds = array<i64: 1, 512>}, {transform_indices = @transform_9, window_bounds = array<i64: 16, 512>}]} {
    %c0 = arith.constant 0 : index
    %c0_0 = arith.constant 0 : index
    %0 = vector.load %arg1[%c0, %c0_0] : memref<16x128xbf16, #tpu.memory_space<vmem>>, vector<16x128xbf16>
    %c0_1 = arith.constant 0 : index
    %c0_2 = arith.constant 0 : index
    %1 = vector.load %arg2[%c0_1, %c0_2] : memref<128x256xbf16, #tpu.memory_space<vmem>>, vector<128x256xbf16>
    %cst = arith.constant dense<0.000000e+00> : vector<16x256xf32>
    %2 = tpu.matmul %0, %1, %cst {dimension_numbers = #tpu.dot_dimension_numbers<[1], [0], [0], [1], [0, 0, 1, 1], [], []>} : vector<16x128xbf16>, vector<128x256xbf16>, vector<16x256xf32> -> vector<16x256xf32>
    %c0_3 = arith.constant 0 : index
    %c0_4 = arith.constant 0 : index
    %3 = vector.load %arg3[%c0_3, %c0_4] : memref<5x256xf32, #tpu.memory_space<vmem>>, vector<1x256xf32>
    %4 = vector.broadcast %3 : vector<1x256xf32> to vector<16x256xf32>
    %5 = arith.addf %2, %4 : vector<16x256xf32>
    %cst_5 = arith.constant 0.000000e+00 : f32
    %6 = vector.broadcast %cst_5 : f32 to vector<16x256xf32>
    %7 = arith.maximumf %5, %6 : vector<16x256xf32>
    %8 = arith.truncf %7 : vector<16x256xf32> to vector<16x256xbf16>
    %c0_6 = arith.constant 0 : index
    %c0_7 = arith.constant 0 : index
    %9 = vector.load %arg4[%c0_6, %c0_7] : memref<256x256xbf16, #tpu.memory_space<vmem>>, vector<256x256xbf16>
    %cst_8 = arith.constant dense<0.000000e+00> : vector<16x256xf32>
    %10 = tpu.matmul %8, %9, %cst_8 {dimension_numbers = #tpu.dot_dimension_numbers<[1], [0], [0], [1], [0, 0, 1, 1], [], []>} : vector<16x256xbf16>, vector<256x256xbf16>, vector<16x256xf32> -> vector<16x256xf32>
    %c1 = arith.constant 1 : index
    %c0_9 = arith.constant 0 : index
    %11 = vector.load %arg3[%c1, %c0_9] : memref<5x256xf32, #tpu.memory_space<vmem>>, vector<1x256xf32>
    %12 = vector.broadcast %11 : vector<1x256xf32> to vector<16x256xf32>
    %13 = arith.addf %10, %12 : vector<16x256xf32>
    %cst_10 = arith.constant 0.000000e+00 : f32
    %14 = vector.broadcast %cst_10 : f32 to vector<16x256xf32>
    %15 = arith.maximumf %13, %14 : vector<16x256xf32>
    %16 = arith.truncf %15 : vector<16x256xf32> to vector<16x256xbf16>
    %c0_11 = arith.constant 0 : index
    %c0_12 = arith.constant 0 : index
    %17 = vector.load %arg5[%c0_11, %c0_12] : memref<256x256xbf16, #tpu.memory_space<vmem>>, vector<256x256xbf16>
    %cst_13 = arith.constant dense<0.000000e+00> : vector<16x256xf32>
    %18 = tpu.matmul %16, %17, %cst_13 {dimension_numbers = #tpu.dot_dimension_numbers<[1], [0], [0], [1], [0, 0, 1, 1], [], []>} : vector<16x256xbf16>, vector<256x256xbf16>, vector<16x256xf32> -> vector<16x256xf32>
    %c2 = arith.constant 2 : index
    %c0_14 = arith.constant 0 : index
    %19 = vector.load %arg3[%c2, %c0_14] : memref<5x256xf32, #tpu.memory_space<vmem>>, vector<1x256xf32>
    %20 = vector.broadcast %19 : vector<1x256xf32> to vector<16x256xf32>
    %21 = arith.addf %18, %20 : vector<16x256xf32>
    %cst_15 = arith.constant 0.000000e+00 : f32
    %22 = vector.broadcast %cst_15 : f32 to vector<16x256xf32>
    %23 = arith.maximumf %21, %22 : vector<16x256xf32>
    %24 = arith.addf %7, %23 : vector<16x256xf32>
    %25 = arith.truncf %24 : vector<16x256xf32> to vector<16x256xbf16>
    %c0_16 = arith.constant 0 : index
    %c0_17 = arith.constant 0 : index
    %26 = vector.load %arg6[%c0_16, %c0_17] : memref<256x256xbf16, #tpu.memory_space<vmem>>, vector<256x256xbf16>
    %cst_18 = arith.constant dense<0.000000e+00> : vector<16x256xf32>
    %27 = tpu.matmul %25, %26, %cst_18 {dimension_numbers = #tpu.dot_dimension_numbers<[1], [0], [0], [1], [0, 0, 1, 1], [], []>} : vector<16x256xbf16>, vector<256x256xbf16>, vector<16x256xf32> -> vector<16x256xf32>
    %c3 = arith.constant 3 : index
    %c0_19 = arith.constant 0 : index
    %28 = vector.load %arg3[%c3, %c0_19] : memref<5x256xf32, #tpu.memory_space<vmem>>, vector<1x256xf32>
    %29 = vector.broadcast %28 : vector<1x256xf32> to vector<16x256xf32>
    %30 = arith.addf %27, %29 : vector<16x256xf32>
    %cst_20 = arith.constant 0.000000e+00 : f32
    %31 = vector.broadcast %cst_20 : f32 to vector<16x256xf32>
    %32 = arith.maximumf %30, %31 : vector<16x256xf32>
    %33 = arith.truncf %32 : vector<16x256xf32> to vector<16x256xbf16>
    %c0_21 = arith.constant 0 : index
    %c0_22 = arith.constant 0 : index
    %34 = vector.load %arg7[%c0_21, %c0_22] : memref<256x256xbf16, #tpu.memory_space<vmem>>, vector<256x256xbf16>
    %cst_23 = arith.constant dense<0.000000e+00> : vector<16x256xf32>
    %35 = tpu.matmul %33, %34, %cst_23 {dimension_numbers = #tpu.dot_dimension_numbers<[1], [0], [0], [1], [0, 0, 1, 1], [], []>} : vector<16x256xbf16>, vector<256x256xbf16>, vector<16x256xf32> -> vector<16x256xf32>
    %c4 = arith.constant 4 : index
    %c0_24 = arith.constant 0 : index
    %36 = vector.load %arg3[%c4, %c0_24] : memref<5x256xf32, #tpu.memory_space<vmem>>, vector<1x256xf32>
    %37 = vector.broadcast %36 : vector<1x256xf32> to vector<16x256xf32>
    %38 = arith.addf %35, %37 : vector<16x256xf32>
    %cst_25 = arith.constant 0.000000e+00 : f32
    %39 = vector.broadcast %cst_25 : f32 to vector<16x256xf32>
    %40 = arith.maximumf %38, %39 : vector<16x256xf32>
    %41 = arith.addf %24, %40 : vector<16x256xf32>
    %42 = arith.truncf %41 : vector<16x256xf32> to vector<16x256xbf16>
    %c0_26 = arith.constant 0 : index
    %c0_27 = arith.constant 0 : index
    %43 = vector.load %arg8[%c0_26, %c0_27] : memref<256x512xbf16, #tpu.memory_space<vmem>>, vector<256x512xbf16>
    %cst_28 = arith.constant dense<0.000000e+00> : vector<16x512xf32>
    %44 = tpu.matmul %42, %43, %cst_28 {dimension_numbers = #tpu.dot_dimension_numbers<[1], [0], [0], [1], [0, 0, 1, 1], [], []>} : vector<16x256xbf16>, vector<256x512xbf16>, vector<16x512xf32> -> vector<16x512xf32>
    %c0_29 = arith.constant 0 : index
    %c0_30 = arith.constant 0 : index
    %45 = vector.load %arg9[%c0_29, %c0_30] : memref<1x512xf32, #tpu.memory_space<vmem>>, vector<1x512xf32>
    %46 = vector.broadcast %45 : vector<1x512xf32> to vector<16x512xf32>
    %47 = arith.addf %44, %46 : vector<16x512xf32>
    %c0_31 = arith.constant 0 : index
    %c0_32 = arith.constant 0 : index
    %48 = vector.load %arg10[%c0_31, %c0_32] : memref<16x512xf32, #tpu.memory_space<vmem>>, vector<16x512xf32>
    tpu.vector_store %arg10[%c0_31, %c0_32], %47 {strides = array<i32>} : memref<16x512xf32, #tpu.memory_space<vmem>>, vector<16x512xf32>,
    return
  }
  func.func @transform_0(%arg0: i32) -> (i32, i32) {
    %c0_i32 = arith.constant 0 : i32
    %c0_i32_0 = arith.constant 0 : i32
    return %arg0, %c0_i32 : i32, i32
  }
  func.func @transform_1(%arg0: i32) -> (i32, i32) {
    %c0_i32 = arith.constant 0 : i32
    %c0_i32_0 = arith.constant 0 : i32
    %c0_i32_1 = arith.constant 0 : i32
    return %c0_i32, %c0_i32_0 : i32, i32
  }
  func.func @transform_2(%arg0: i32) -> (i32, i32) {
    %c0_i32 = arith.constant 0 : i32
    %c0_i32_0 = arith.constant 0 : i32
    %c0_i32_1 = arith.constant 0 : i32
    return %c0_i32, %c0_i32_0 : i32, i32
  }
  func.func @transform_3(%arg0: i32) -> (i32, i32) {
    %c0_i32 = arith.constant 0 : i32
    %c0_i32_0 = arith.constant 0 : i32
    %c0_i32_1 = arith.constant 0 : i32
    return %c0_i32, %c0_i32_0 : i32, i32
  }
  func.func @transform_4(%arg0: i32) -> (i32, i32) {
    %c0_i32 = arith.constant 0 : i32
    %c0_i32_0 = arith.constant 0 : i32
    %c0_i32_1 = arith.constant 0 : i32
    return %c0_i32, %c0_i32_0 : i32, i32
  }
  func.func @transform_5(%arg0: i32) -> (i32, i32) {
    %c0_i32 = arith.constant 0 : i32
    %c0_i32_0 = arith.constant 0 : i32
    %c0_i32_1 = arith.constant 0 : i32
    return %c0_i32, %c0_i32_0 : i32, i32
  }
  func.func @transform_6(%arg0: i32) -> (i32, i32) {
    %c0_i32 = arith.constant 0 : i32
    %c0_i32_0 = arith.constant 0 : i32
    %c0_i32_1 = arith.constant 0 : i32
    return %c0_i32, %c0_i32_0 : i32, i32
  }
  func.func @transform_7(%arg0: i32) -> (i32, i32) {
    %c0_i32 = arith.constant 0 : i32
    %c0_i32_0 = arith.constant 0 : i32
    %c0_i32_1 = arith.constant 0 : i32
    return %c0_i32, %c0_i32_0 : i32, i32
  }
  func.func @transform_8(%arg0: i32) -> (i32, i32) {
    %c0_i32 = arith.constant 0 : i32
    %c0_i32_0 = arith.constant 0 : i32
    %c0_i32_1 = arith.constant 0 : i32
    return %c0_i32, %c0_i32_0 : i32, i32
  }
  func.func @transform_9(%arg0: i32) -> (i32, i32) {
    %c0_i32 = arith.constant 0 : i32
    %c0_i32_0 = arith.constant 0 : i32
    return %arg0, %c0_i32 : i32, i32
  }
}

module attributes {stable_mosaic.version = 11 : i64} {
  func.func @_mlp_kernel(%arg0: i32, %arg1: memref<16x128xbf16, #tpu.memory_space<vmem>>, %arg2: memref<128x256xbf16, #tpu.memory_space<vmem>>, %arg3: memref<5x256xf32, #tpu.memory_space<vmem>>, %arg4: memref<256x256xbf16, #tpu.memory_space<vmem>>, %arg5: memref<256x256xbf16, #tpu.memory_space<vmem>>, %arg6: memref<256x256xbf16, #tpu.memory_space<vmem>>, %arg7: memref<256x256xbf16, #tpu.memory_space<vmem>>, %arg8: memref<256x512xbf16, #tpu.memory_space<vmem>>, %arg9: memref<1x512xf32, #tpu.memory_space<vmem>>, %arg10: memref<16x512xf32, #tpu.memory_space<vmem>>) attributes {dimension_semantics = [#tpu.dimension_semantics<parallel>], iteration_bounds = array<i64: 1>, scalar_prefetch = 0 : i64, scratch_operands = 0 : i64, tpu.core_type = #tpu.core_type<tc>, window_params = [{transform_indices = @transform_0, window_bounds = array<i64: 16, 128>}, {pipeline_mode = #tpu.pipeline_mode<synchronous>, transform_indices = @transform_1, window_bounds = array<i64: 128, 256>}, {pipeline_mode = #tpu.pipeline_mode<synchronous>, transform_indices = @transform_2, window_bounds = array<i64: 5, 256>}, {pipeline_mode = #tpu.pipeline_mode<synchronous>, transform_indices = @transform_3, window_bounds = array<i64: 256, 256>}, {pipeline_mode = #tpu.pipeline_mode<synchronous>, transform_indices = @transform_4, window_bounds = array<i64: 256, 256>}, {pipeline_mode = #tpu.pipeline_mode<synchronous>, transform_indices = @transform_5, window_bounds = array<i64: 256, 256>}, {pipeline_mode = #tpu.pipeline_mode<synchronous>, transform_indices = @transform_6, window_bounds = array<i64: 256, 256>}, {pipeline_mode = #tpu.pipeline_mode<synchronous>, transform_indices = @transform_7, window_bounds = array<i64: 256, 512>}, {pipeline_mode = #tpu.pipeline_mode<synchronous>, transform_indices = @transform_8, window_bounds = array<i64: 1, 512>}, {transform_indices = @transform_9, window_bounds = array<i64: 16, 512>}]} {
    %c0 = arith.constant 0 : index
    %c0_0 = arith.constant 0 : index
    %0 = vector.load %arg1[%c0, %c0_0] : memref<16x128xbf16, #tpu.memory_space<vmem>>, vector<16x128xbf16>
    %c0_1 = arith.constant 0 : index
    %c0_2 = arith.constant 0 : index
    %1 = vector.load %arg2[%c0_1, %c0_2] : memref<128x256xbf16, #tpu.memory_space<vmem>>, vector<128x256xbf16>
    %cst = arith.constant dense<0.000000e+00> : vector<16x256xf32>
    %2 = tpu.matmul %0, %1, %cst {dimension_numbers = #tpu.dot_dimension_numbers<[1], [0], [0], [1], [0, 0, 1, 1], [], []>} : vector<16x128xbf16>, vector<128x256xbf16>, vector<16x256xf32> -> vector<16x256xf32>
    %c0_3 = arith.constant 0 : index
    %c0_4 = arith.constant 0 : index
    %3 = vector.load %arg3[%c0_3, %c0_4] : memref<5x256xf32, #tpu.memory_space<vmem>>, vector<1x256xf32>
    %4 = vector.broadcast %3 : vector<1x256xf32> to vector<16x256xf32>
    %5 = arith.addf %2, %4 : vector<16x256xf32>
    %cst_5 = arith.constant 0.000000e+00 : f32
    %6 = vector.broadcast %cst_5 : f32 to vector<16x256xf32>
    %7 = arith.maximumf %5, %6 : vector<16x256xf32>
    %8 = arith.truncf %7 : vector<16x256xf32> to vector<16x256xbf16>
    %c0_6 = arith.constant 0 : index
    %c0_7 = arith.constant 0 : index
    %9 = vector.load %arg4[%c0_6, %c0_7] : memref<256x256xbf16, #tpu.memory_space<vmem>>, vector<256x256xbf16>
    %cst_8 = arith.constant dense<0.000000e+00> : vector<16x256xf32>
    %10 = tpu.matmul %8, %9, %cst_8 {dimension_numbers = #tpu.dot_dimension_numbers<[1], [0], [0], [1], [0, 0, 1, 1], [], []>} : vector<16x256xbf16>, vector<256x256xbf16>, vector<16x256xf32> -> vector<16x256xf32>
    %c1 = arith.constant 1 : index
    %c0_9 = arith.constant 0 : index
    %11 = vector.load %arg3[%c1, %c0_9] : memref<5x256xf32, #tpu.memory_space<vmem>>, vector<1x256xf32>
    %12 = vector.broadcast %11 : vector<1x256xf32> to vector<16x256xf32>
    %13 = arith.addf %10, %12 : vector<16x256xf32>
    %cst_10 = arith.constant 0.000000e+00 : f32
    %14 = vector.broadcast %cst_10 : f32 to vector<16x256xf32>
    %15 = arith.maximumf %13, %14 : vector<16x256xf32>
    %16 = arith.truncf %15 : vector<16x256xf32> to vector<16x256xbf16>
    %c0_11 = arith.constant 0 : index
    %c0_12 = arith.constant 0 : index
    %17 = vector.load %arg5[%c0_11, %c0_12] : memref<256x256xbf16, #tpu.memory_space<vmem>>, vector<256x256xbf16>
    %cst_13 = arith.constant dense<0.000000e+00> : vector<16x256xf32>
    %18 = tpu.matmul %16, %17, %cst_13 {dimension_numbers = #tpu.dot_dimension_numbers<[1], [0], [0], [1], [0, 0, 1, 1], [], []>} : vector<16x256xbf16>, vector<256x256xbf16>, vector<16x256xf32> -> vector<16x256xf32>
    %c2 = arith.constant 2 : index
    %c0_14 = arith.constant 0 : index
    %19 = vector.load %arg3[%c2, %c0_14] : memref<5x256xf32, #tpu.memory_space<vmem>>, vector<1x256xf32>
    %20 = vector.broadcast %19 : vector<1x256xf32> to vector<16x256xf32>
    %21 = arith.addf %18, %20 : vector<16x256xf32>
    %cst_15 = arith.constant 0.000000e+00 : f32
    %22 = vector.broadcast %cst_15 : f32 to vector<16x256xf32>
    %23 = arith.maximumf %21, %22 : vector<16x256xf32>
    %24 = arith.addf %7, %23 : vector<16x256xf32>
    %25 = arith.truncf %24 : vector<16x256xf32> to vector<16x256xbf16>
    %c0_16 = arith.constant 0 : index
    %c0_17 = arith.constant 0 : index
    %26 = vector.load %arg6[%c0_16, %c0_17] : memref<256x256xbf16, #tpu.memory_space<vmem>>, vector<256x256xbf16>
    %cst_18 = arith.constant dense<0.000000e+00> : vector<16x256xf32>
    %27 = tpu.matmul %25, %26, %cst_18 {dimension_numbers = #tpu.dot_dimension_numbers<[1], [0], [0], [1], [0, 0, 1, 1], [], []>} : vector<16x256xbf16>, vector<256x256xbf16>, vector<16x256xf32> -> vector<16x256xf32>
    %c3 = arith.constant 3 : index
    %c0_19 = arith.constant 0 : index
    %28 = vector.load %arg3[%c3, %c0_19] : memref<5x256xf32, #tpu.memory_space<vmem>>, vector<1x256xf32>
    %29 = vector.broadcast %28 : vector<1x256xf32> to vector<16x256xf32>
    %30 = arith.addf %27, %29 : vector<16x256xf32>
    %cst_20 = arith.constant 0.000000e+00 : f32
    %31 = vector.broadcast %cst_20 : f32 to vector<16x256xf32>
    %32 = arith.maximumf %30, %31 : vector<16x256xf32>
    %33 = arith.truncf %32 : vector<16x256xf32> to vector<16x256xbf16>
    %c0_21 = arith.constant 0 : index
    %c0_22 = arith.constant 0 : index
    %34 = vector.load %arg7[%c0_21, %c0_22] : memref<256x256xbf16, #tpu.memory_space<vmem>>, vector<256x256xbf16>
    %cst_23 = arith.constant dense<0.000000e+00> : vector<16x256xf32>
    %35 = tpu.matmul %33, %34, %cst_23 {dimension_numbers = #tpu.dot_dimension_numbers<[1], [0], [0], [1], [0, 0, 1, 1], [], []>} : vector<16x256xbf16>, vector<256x256xbf16>, vector<16x256xf32> -> vector<16x256xf32>
    %c4 = arith.constant 4 : index
    %c0_24 = arith.constant 0 : index
    %36 = vector.load %arg3[%c4, %c0_24] : memref<5x256xf32, #tpu.memory_space<vmem>>, vector<1x256xf32>
    %37 = vector.broadcast %36 : vector<1x256xf32> to vector<16x256xf32>
    %38 = arith.addf %35, %37 : vector<16x256xf32>
    %cst_25 = arith.constant 0.000000e+00 : f32
    %39 = vector.broadcast %cst_25 : f32 to vector<16x256xf32>
    %40 = arith.maximumf %38, %39 : vector<16x256xf32>
    %41 = arith.addf %24, %40 : vector<16x256xf32>
    %42 = arith.truncf %41 : vector<16x256xf32> to vector<16x256xbf16>
    %c0_26 = arith.constant 0 : index
    %c0_27 = arith.constant 0 : index
    %43 = vector.load %arg8[%c0_26, %c0_27] : memref<256x512xbf16, #tpu.memory_space<vmem>>, vector<256x512xbf16>
    %cst_28 = arith.constant dense<0.000000e+00> : vector<16x512xf32>
    %44 = tpu.matmul %42, %43, %cst_28 {dimension_numbers = #tpu.dot_dimension_numbers<[1], [0], [0], [1], [0, 0, 1, 1], [], []>} : vector<16x256xbf16>, vector<256x512xbf16>, vector<16x512xf32> -> vector<16x512xf32>
    %c0_29 = arith.constant 0 : index
    %c0_30 = arith.constant 0 : index
    %45 = vector.load %arg9[%c0_29, %c0_30] : memref<1x512xf32, #tpu.memory_space<vmem>>, vector<1x512xf32>
    %46 = vector.broadcast %45 : vector<1x512xf32> to vector<16x512xf32>
    %47 = arith.addf %44, %46 : vector<16x512xf32>
    %c0_31 = arith.constant 0 : index
    %c0_32 = arith.constant 0 : index
    %48 = vector.load %arg10[%c0_31, %c0_32] : memref<16x512xf32, #tpu.memory_space<vmem>>, vector<16x512xf32>
    tpu.vector_store %arg10[%c0_31, %c0_32], %47 {strides = array<i32>} : memref<16x512xf32, #tpu.memory_space<vmem>>, vector<16x512xf32>,
    return
  }
  func.func @transform_0(%arg0: i32) -> (i32, i32) {
    %c0_i32 = arith.constant 0 : i32
    %c0_i32_0 = arith.constant 0 : i32
    return %arg0, %c0_i32 : i32, i32
  }
  func.func @transform_1(%arg0: i32) -> (i32, i32) {
    %c0_i32 = arith.constant 0 : i32
    %c0_i32_0 = arith.constant 0 : i32
    %c0_i32_1 = arith.constant 0 : i32
    return %c0_i32, %c0_i32_0 : i32, i32
  }
  func.func @transform_2(%arg0: i32) -> (i32, i32) {
    %c0_i32 = arith.constant 0 : i32
    %c0_i32_0 = arith.constant 0 : i32
    %c0_i32_1 = arith.constant 0 : i32
    return %c0_i32, %c0_i32_0 : i32, i32
  }
  func.func @transform_3(%arg0: i32) -> (i32, i32) {
    %c0_i32 = arith.constant 0 : i32
    %c0_i32_0 = arith.constant 0 : i32
    %c0_i32_1 = arith.constant 0 : i32
    return %c0_i32, %c0_i32_0 : i32, i32
  }
  func.func @transform_4(%arg0: i32) -> (i32, i32) {
    %c0_i32 = arith.constant 0 : i32
    %c0_i32_0 = arith.constant 0 : i32
    %c0_i32_1 = arith.constant 0 : i32
    return %c0_i32, %c0_i32_0 : i32, i32
  }
  func.func @transform_5(%arg0: i32) -> (i32, i32) {
    %c0_i32 = arith.constant 0 : i32
    %c0_i32_0 = arith.constant 0 : i32
    %c0_i32_1 = arith.constant 0 : i32
    return %c0_i32, %c0_i32_0 : i32, i32
  }
  func.func @transform_6(%arg0: i32) -> (i32, i32) {
    %c0_i32 = arith.constant 0 : i32
    %c0_i32_0 = arith.constant 0 : i32
    %c0_i32_1 = arith.constant 0 : i32
    return %c0_i32, %c0_i32_0 : i32, i32
  }
  func.func @transform_7(%arg0: i32) -> (i32, i32) {
    %c0_i32 = arith.constant 0 : i32
    %c0_i32_0 = arith.constant 0 : i32
    %c0_i32_1 = arith.constant 0 : i32
    return %c0_i32, %c0_i32_0 : i32, i32
  }
  func.func @transform_8(%arg0: i32) -> (i32, i32) {
    %c0_i32 = arith.constant 0 : i32
    %c0_i32_0 = arith.constant 0 : i32
    %c0_i32_1 = arith.constant 0 : i32
    return %c0_i32, %c0_i32_0 : i32, i32
  }
  func.func @transform_9(%arg0: i32) -> (i32, i32) {
    %c0_i32 = arith.constant 0 : i32
    %c0_i32_0 = arith.constant 0 : i32
    return %arg0, %c0_i32 : i32, i32
  }
}

</mosaic_0001>

<bundles_post_ra>
// kernel: tpu_custom_call.1
= control target key start
LH: loop header
LB: loop body
LE: loop exit
PB: predicated region body
PF: predicated region fallthrough
CT: control target
= control target key end

     0   :  { %14 = vsyncpa [#allocation3], 0  ;;  %s2875_s0 = inlined_call_operand.hbm [shape: bf16[16,128], index: 0, kind: input, shape index: {}]   ;;  %s2876_s1 = inlined_call_operand.hbm [shape: bf16[128,256], index: 1, kind: input, shape index: {}]   ;;  %s2877_s2 = inlined_call_operand.hbm [shape: f32[5,256], index: 2, kind: input, shape index: {}]   ;;  %s2878_s3 = inlined_call_operand.hbm [shape: bf16[256,256], index: 3, kind: input, shape index: {}]   ;;  %s2879_s4 = inlined_call_operand.hbm [shape: bf16[256,256], index: 4, kind: input, shape index: {}]   ;;  %s2880_s5 = inlined_call_operand.hbm [shape: bf16[256,256], index: 5, kind: input, shape index: {}]   ;;  %s2881_s6 = inlined_call_operand.hbm [shape: bf16[256,256], index: 6, kind: input, shape index: {}]   ;;  %s2882_s7 = inlined_call_operand.hbm [shape: bf16[256,512], index: 7, kind: input, shape index: {}]   ;;  %s2883_s8 = inlined_call_operand.vmem [shape: f32[1,512], index: 8, kind: input, shape index: {}]   ;;  %s2884_s9 = inlined_call_operand.hbm [shape: f32[16,512], index: 9, kind: output, shape index: {}]  }
   0x1   :  { %15 = vsyncpa [#allocation6], 0 }
   0x2   :  { %16 = vsyncpa [#allocation9], 0 }
   0x3   :  { %17 = vsyncpa [#allocation12], 0 }
   0x4   :  { %18 = vsyncpa [#allocation15], 0 }
   0x5   :  { %19 = vsyncpa [#allocation4], 0  ;;  %s2601_s30 = smov [#allocation5]   ;;  %s2391_s13 = scalar_lea.hbm %s2876_s1, 2048 }
   0x6   :  { %s37_s10 = sshll.u32 %s2601_s30, 4  ;;  %p2392_p0 = scmp.ne.s32.totalorder %s2876_s1, %s2391_s13  ;;  %s38_s10 = int_to_ptr.vmem [resolvable:$true] %s37_s10 }
   0x7   :  { %p2395_p1 = scmp.lt.u32.totalorder %s2391_s13, %s2876_s1 }
   0x9   :  { %p2397_p2 = pnand %p2395_p1, %p2392_p0 }
   0xb   :  { %2400 = shalt.err (!%p2397_p2)
}
   0xc   :  { %s2401_s18 = scalar_lea.vmem %s38_s10, 2048  ;;  %p2406_p4 = scmp.lt.s32.totalorder %s38_s10, %s38_s10 }
   0xd   :  { %p2402_p3 = scmp.ne.s32.totalorder %s38_s10, %s2401_s18  ;;  %p2407_p5 = scmp.lt.s32.totalorder %s2401_s18, %s2401_s18 }
   0xf   :  { %p2408_p6 = por %p2407_p5, %p2406_p4 }
  0x11   :  { %p2409_p7 = pnand %p2408_p6, %p2402_p3 }
  0x13   :  { %2412 = shalt.err (!%p2409_p7)
}
  0x14   :  { %s2602_s19 = smov 128   ;;  %s2603_s20 = smov 8  }
  0x15   :  { %43 = dma.hbm_to_vmem [thread:$0]  %s2876_s1, 2048, %s38_s10, [#allocation6], %s2602_s19, %s2602_s19, %s2603_s20  }
  0x16   :  { %s2604_s23 = smov [#allocation8]   ;;  %s2605_s25 = smov [#allocation11]  }
  0x17   :  { %s59_s24 = sshll.u32 %s2604_s23, 4  ;;  %s83_s26 = sshll.u32 %s2605_s25, 4  ;;  %s60_s24 = int_to_ptr.vmem [resolvable:$true] %s59_s24  ;;  %s84_s26 = int_to_ptr.vmem [resolvable:$true] %s83_s26 }
  0x18   :  { %s2413_s29 = scalar_lea.hbm %s2878_s3, 4096 }
  0x19   :  { %p2414_p8 = scmp.ne.s32.totalorder %s2878_s3, %s2413_s29  ;;  %p2417_p9 = scmp.lt.u32.totalorder %s2413_s29, %s2878_s3 }
  0x1b   :  { %p2419_p10 = pnand %p2417_p9, %p2414_p8 }
  0x1d   :  { %2422 = shalt.err (!%p2419_p10)
}
  0x1e   :  { %s2423_s1 = scalar_lea.vmem %s60_s24, 4096  ;;  %p2428_p12 = scmp.lt.s32.totalorder %s60_s24, %s60_s24 }
  0x1f   :  { %p2424_p11 = scmp.ne.s32.totalorder %s60_s24, %s2423_s1  ;;  %p2429_p13 = scmp.lt.s32.totalorder %s2423_s1, %s2423_s1 }
  0x21   :  { %p2430_p0 = por %p2429_p13, %p2428_p12 }
  0x23   :  { %p2431_p1 = pnand %p2430_p0, %p2424_p11 }
  0x25   :  { %2434 = shalt.err (!%p2431_p1)
}
  0x26   :  { %65 = dma.hbm_to_vmem [thread:$0]  %s2878_s3, 4096, %s60_s24, [#allocation9], %s2602_s19, %s2602_s19, %s2603_s20  }
  0x27   :  { %s2435_s17 = scalar_lea.hbm %s2880_s5, 4096 }
  0x28   :  { %p2436_p2 = scmp.ne.s32.totalorder %s2880_s5, %s2435_s17  ;;  %p2439_p3 = scmp.lt.u32.totalorder %s2435_s17, %s2880_s5 }
  0x2a   :  { %p2441_p4 = pnand %p2439_p3, %p2436_p2 }
  0x2c   :  { %2444 = shalt.err (!%p2441_p4)
}
  0x2d   :  { %s2445_s25 = scalar_lea.vmem %s84_s26, 4096  ;;  %p2450_p6 = scmp.lt.s32.totalorder %s84_s26, %s84_s26 }
  0x2e   :  { %p2446_p5 = scmp.ne.s32.totalorder %s84_s26, %s2445_s25  ;;  %p2451_p7 = scmp.lt.s32.totalorder %s2445_s25, %s2445_s25 }
  0x30   :  { %p2452_p8 = por %p2451_p7, %p2450_p6 }
  0x32   :  { %p2453_p9 = pnand %p2452_p8, %p2446_p5 }
  0x34   :  { %2456 = shalt.err (!%p2453_p9)
}
  0x35   :  { %89 = dma.hbm_to_vmem [thread:$0]  %s2880_s5, 4096, %s84_s26, [#allocation12], %s2602_s19, %s2602_s19, %s2603_s20  }
  0x36   :  { %s2606_s27 = smov [#allocation2]   ;;  %s2457_s11 = scalar_lea.hbm %s2875_s0, 128 }
  0x37   :  { %s25_s28 = sshll.u32 %s2606_s27, 4  ;;  %p2458_p10 = scmp.ne.s32.totalorder %s2875_s0, %s2457_s11  ;;  %s26_s28 = int_to_ptr.vmem [resolvable:$true] %s25_s28 }
  0x38   :  { %p2461_p11 = scmp.lt.u32.totalorder %s2457_s11, %s2875_s0 }
  0x3a   :  { %p2463_p12 = pnand %p2461_p11, %p2458_p10 }
  0x3c   :  { %2466 = shalt.err (!%p2463_p12)
}
  0x3d   :  { %s2467_s14 = scalar_lea.vmem %s26_s28, 128  ;;  %p2472_p0 = scmp.lt.s32.totalorder %s26_s28, %s26_s28 }
  0x3e   :  { %p2468_p13 = scmp.ne.s32.totalorder %s26_s28, %s2467_s14  ;;  %p2473_p1 = scmp.lt.s32.totalorder %s2467_s14, %s2467_s14 }
  0x40   :  { %p2474_p2 = por %p2473_p1, %p2472_p0 }
  0x42   :  { %p2475_p3 = pnand %p2474_p2, %p2468_p13 }
  0x44   :  { %2478 = shalt.err (!%p2475_p3)
}
  0x45   :  { %s2607_s5 = smov 64   ;;  %s2608_s26 = smov 4  }
  0x46   :  { %31 = dma.hbm_to_vmem [thread:$0]  %s2875_s0, 128, %s26_s28, [#allocation3], %s2607_s5, %s2607_s5, %s2608_s26  }
  0x47   :  { %s2609_s17 = smov [#allocation7]   ;;  %s2610_s21 = smov [#allocation10]  }
  0x48   :  { %s50_s18 = sshll.u32 %s2609_s17, 4  ;;  %s71_s22 = sshll.u32 %s2610_s21, 4  ;;  %s51_s18 = int_to_ptr.vmem [resolvable:$true] %s50_s18  ;;  %s2726_s22 = int_to_ptr.vmem [resolvable:$true] %s71_s22 }
  0x49   :  { %s2479_s3 = scalar_lea.hbm %s2877_s2, 256 }
  0x4a   :  { %p2480_p4 = scmp.ne.s32.totalorder %s2877_s2, %s2479_s3  ;;  %p2483_p5 = scmp.lt.u32.totalorder %s2479_s3, %s2877_s2 }
  0x4c   :  { %p2485_p6 = pnand %p2483_p5, %p2480_p4 }
  0x4e   :  { %2488 = shalt.err (!%p2485_p6)
}
  0x4f   :  { %s2489_s0 = scalar_lea.vmem %s51_s18, 256  ;;  %p2494_p8 = scmp.lt.s32.totalorder %s51_s18, %s51_s18 }
  0x50   :  { %p2490_p7 = scmp.ne.s32.totalorder %s51_s18, %s2489_s0  ;;  %p2495_p9 = scmp.lt.s32.totalorder %s2489_s0, %s2489_s0 }
  0x52   :  { %p2496_p10 = por %p2495_p9, %p2494_p8 }
  0x54   :  { %p2497_p11 = pnand %p2496_p10, %p2490_p7 }
  0x56   :  { %2500 = shalt.err (!%p2497_p11)
}
  0x57   :  { %53 = dma.hbm_to_vmem [thread:$0]  %s2877_s2, 256, %s51_s18, [#allocation6]  }
  0x58   :  { %s2501_s1 = scalar_lea.hbm %s2879_s4, 4096 }
  0x59   :  { %p2502_p12 = scmp.ne.s32.totalorder %s2879_s4, %s2501_s1  ;;  %p2505_p13 = scmp.lt.u32.totalorder %s2501_s1, %s2879_s4 }
  0x5b   :  { %p2507_p0 = pnand %p2505_p13, %p2502_p12 }
  0x5d   :  { %2510 = shalt.err (!%p2507_p0)
}
  0x5e   :  { %s2511_s15 = scalar_lea.vmem %s2726_s22, 4096  ;;  %p2516_p2 = scmp.lt.s32.totalorder %s2726_s22, %s2726_s22 }
  0x5f   :  { %p2512_p1 = scmp.ne.s32.totalorder %s2726_s22, %s2511_s15  ;;  %p2517_p3 = scmp.lt.s32.totalorder %s2511_s15, %s2511_s15 }
  0x61   :  { %p2518_p4 = por %p2517_p3, %p2516_p2 }
  0x63   :  { %p2519_p5 = pnand %p2518_p4, %p2512_p1 }
  0x65   :  { %2522 = shalt.err (!%p2519_p5)
}
  0x66   :  { %77 = dma.hbm_to_vmem [thread:$0]  %s2879_s4, 4096, %s2726_s22, [#allocation9], %s2602_s19, %s2602_s19, %s2603_s20  }
  0x67   :  { %s2611_s17 = smov [#allocation13]   ;;  %s2612_s21 = smov [#allocation14]  }
  0x68   :  { %s95_s18 = sshll.u32 %s2611_s17, 4  ;;  %s107_s23 = sshll.u32 %s2612_s21, 4  ;;  %s96_s18 = int_to_ptr.vmem [resolvable:$true] %s95_s18  ;;  %s2760_s23 = int_to_ptr.vmem [resolvable:$true] %s107_s23 }
  0x69   :  { %s2523_s24 = scalar_lea.hbm %s2881_s6, 4096 }
  0x6a   :  { %p2524_p6 = scmp.ne.s32.totalorder %s2881_s6, %s2523_s24  ;;  %p2527_p7 = scmp.lt.u32.totalorder %s2523_s24, %s2881_s6 }
  0x6c   :  { %p2529_p8 = pnand %p2527_p7, %p2524_p6 }
  0x6e   :  { %2532 = shalt.err (!%p2529_p8)
}
  0x6f   :  { %s2533_s4 = scalar_lea.vmem %s96_s18, 4096  ;;  %p2538_p10 = scmp.lt.s32.totalorder %s96_s18, %s96_s18 }
  0x70   :  { %p2534_p9 = scmp.ne.s32.totalorder %s96_s18, %s2533_s4  ;;  %p2539_p11 = scmp.lt.s32.totalorder %s2533_s4, %s2533_s4 }
  0x72   :  { %p2540_p12 = por %p2539_p11, %p2538_p10 }
  0x74   :  { %p2541_p13 = pnand %p2540_p12, %p2534_p9 }
  0x76   :  { %2544 = shalt.err (!%p2541_p13)
}
  0x77   :  { %101 = dma.hbm_to_vmem [thread:$0]  %s2881_s6, 4096, %s96_s18, [#allocation12], %s2602_s19, %s2602_s19, %s2603_s20  }
  0x78   :  { %s2545_s13 = scalar_lea.hbm %s2882_s7, 8192 }
  0x79   :  { %p2546_p0 = scmp.ne.s32.totalorder %s2882_s7, %s2545_s13  ;;  %p2549_p1 = scmp.lt.u32.totalorder %s2545_s13, %s2882_s7 }
  0x7b   :  { %p2551_p2 = pnand %p2549_p1, %p2546_p0 }
  0x7d   :  { %2554 = shalt.err (!%p2551_p2)
}
  0x7e   :  { %s2555_s26 = scalar_lea.vmem %s2760_s23, 8192  ;;  %p2560_p4 = scmp.lt.s32.totalorder %s2760_s23, %s2760_s23 }
  0x7f   :  { %p2556_p3 = scmp.ne.s32.totalorder %s2760_s23, %s2555_s26  ;;  %p2561_p5 = scmp.lt.s32.totalorder %s2555_s26, %s2555_s26 }
  0x81   :  { %p2562_p6 = por %p2561_p5, %p2560_p4 }
  0x83   :  { %p2563_p7 = pnand %p2562_p6, %p2556_p3 }
  0x85   :  { %2566 = shalt.err (!%p2563_p7)
}
  0x86   :  { %s2613_s6 = smov 256   ;;  %s2614_s19 = smov 16  }
  0x87   :  { %113 = dma.hbm_to_vmem [thread:$0]  %s2882_s7, 8192, %s2760_s23, [#allocation15], %s2613_s6, %s2613_s6, %s2614_s19  }
  0x88   :  { %2589 = dma.done.wait [#allocation3], 128  }
  0x89   :  { %2590 = vsyncadd [#allocation3], 4294967168 }
  0x8a   :  { %2591 = dma.done.wait [#allocation6], 2304  }
  0x8b   :  { %2592 = vsyncadd [#allocation6], 4294964992 }
  0x8c   :  { %2593 = dma.done.wait [#allocation9], 8192  }
  0x8d   :  { %2594 = vsyncadd [#allocation9], 4294959104 }
  0x8e   :  { %2595 = dma.done.wait [#allocation12], 8192  }
  0x8f   :  { %2596 = vsyncadd [#allocation12], 4294959104 }
  0x90   :  { %2597 = dma.done.wait [#allocation15], 8192  }
  0x91   :  { %2598 = vsyncadd [#allocation15], 4294959104  ;;  %v2615_v0 = vmov 0   ;;  %v2078_v1 = vld [vmem:[#allocation5 + $0x4] ss:$8 sps:$4 sm:$0xff]   ;;  %v2102_v27 = vld [vmem:[#allocation2] sm:$0xff]  }
  0x92   :  { %289 = vmatprep.mubr.bf16.mxu0 %v2615_v0  ;;  %v2080_v2 = vld [vmem:[#allocation5] ss:$8 sps:$4 sm:$0xff]   ;;  %257 = vmatprep.subr.bf16.mxu0 %v2078_v1  ;;  %v2081_v3 = vld [vmem:[#allocation5 + $0x14] ss:$8 sps:$4 sm:$0xff]   ;;  %v2083_v4 = vld [vmem:[#allocation5 + $0x10] ss:$8 sps:$4 sm:$0xff]  }
  0x93   :  { %258 = vmatpush1.bf16.msra.mxu0 %v2080_v2  ;;  %v2084_v5 = vld [vmem:[#allocation5 + $0x24] ss:$8 sps:$4 sm:$0xff]   ;;  %v2086_v6 = vld [vmem:[#allocation5 + $0x20] ss:$8 sps:$4 sm:$0xff]   ;;  %v2087_v7 = vld [vmem:[#allocation5 + $0x34] ss:$8 sps:$4 sm:$0xff]  }
  0x94   :  { %259 = vmatprep.subr.bf16.mxu0 %v2081_v3  ;;  %v2089_v8 = vld [vmem:[#allocation5 + $0x30] ss:$8 sps:$4 sm:$0xff]   ;;  %v2090_v9 = vld [vmem:[#allocation5 + $0x44] ss:$8 sps:$4 sm:$0xff]   ;;  %v2103_v10 = vld [vmem:[#allocation8 + $0x4] ss:$8 sps:$4 sm:$0xff]  }
  0x95   :  { %v2105_v11 = vld [vmem:[#allocation8] ss:$8 sps:$4 sm:$0xff]   ;;  %v2106_v12 = vld [vmem:[#allocation8 + $0x14] ss:$8 sps:$4 sm:$0xff]   ;;  %511 = vmatprep.subr.bf16.mxu1 %v2103_v10  ;;  %v2092_v13 = vld [vmem:[#allocation5 + $0x40] ss:$8 sps:$4 sm:$0xff]  }
  0x96   :  { %512 = vmatpush1.bf16.msra.mxu1 %v2105_v11  ;;  %v2108_v14 = vld [vmem:[#allocation8 + $0x10] ss:$8 sps:$4 sm:$0xff]   ;;  %v2093_v15 = vld [vmem:[#allocation5 + $0x54] ss:$8 sps:$4 sm:$0xff]   ;;  %v2095_v17 = vld [vmem:[#allocation5 + $0x50] ss:$8 sps:$4 sm:$0xff]  }
  0x97   :  { %260 = vmatpush1.bf16.msra.mxu0 %v2083_v4  ;;  %513 = vmatprep.subr.bf16.mxu1 %v2106_v12  ;;  %v2109_v16 = vld [vmem:[#allocation8 + $0x24] ss:$8 sps:$4 sm:$0xff]   ;;  %v2111_v18 = vld [vmem:[#allocation8 + $0x20] ss:$8 sps:$4 sm:$0xff]   ;;  %v2096_v19 = vld [vmem:[#allocation5 + $0x64] ss:$8 sps:$4 sm:$0xff]  }
  0x98   :  { %261 = vmatprep.subr.bf16.mxu0 %v2084_v5  ;;  %v2112_v20 = vld [vmem:[#allocation8 + $0x34] ss:$8 sps:$4 sm:$0xff]   ;;  %v2098_v21 = vld [vmem:[#allocation5 + $0x60] ss:$8 sps:$4 sm:$0xff]   ;;  %v2099_v23 = vld [vmem:[#allocation5 + $0x74] ss:$8 sps:$4 sm:$0xff]  }
  0x99   :  { %v2114_v22 = vld [vmem:[#allocation8 + $0x30] ss:$8 sps:$4 sm:$0xff]   ;;  %v2115_v24 = vld [vmem:[#allocation8 + $0x44] ss:$8 sps:$4 sm:$0xff]   ;;  %v2101_v25 = vld [vmem:[#allocation5 + $0x70] ss:$8 sps:$4 sm:$0xff]  }
  0x9a   :  { %514 = vmatpush1.bf16.msra.mxu1 %v2108_v14  ;;  %v2117_v26 = vld [vmem:[#allocation8 + $0x40] ss:$8 sps:$4 sm:$0xff]   ;;  %v2118_v28 = vld [vmem:[#allocation8 + $0x54] ss:$8 sps:$4 sm:$0xff]   ;;  %v2120_v29 = vld [vmem:[#allocation8 + $0x50] ss:$8 sps:$4 sm:$0xff]   ;;  %v161_v14 = vlaneseq }
  0x9b   :  { %262 = vmatpush1.bf16.msra.mxu0 %v2086_v6  ;;  %515 = vmatprep.subr.bf16.mxu1 %v2109_v16  ;;  %v2121_v30 = vld [vmem:[#allocation8 + $0x64] ss:$8 sps:$4 sm:$0xff]   ;;  %v2123_v31 = vld [vmem:[#allocation8 + $0x60] ss:$8 sps:$4 sm:$0xff]   ;;  %v2124_v32 = vld [vmem:[#allocation8 + $0x74] ss:$8 sps:$4 sm:$0xff]  }
  0x9c   :  { %263 = vmatprep.subr.bf16.mxu0 %v2087_v7  ;;  %v2126_v33 = vld [vmem:[#allocation8 + $0x70] ss:$8 sps:$4 sm:$0xff]   ;;  %v2127_v34 = vld [vmem:[#allocation8 + $0x84] ss:$8 sps:$4 sm:$0xff]   ;;  %v2129_v35 = vld [vmem:[#allocation8 + $0x80] ss:$8 sps:$4 sm:$0xff]  }
  0x9d   :  { %v2130_v36 = vld [vmem:[#allocation8 + $0x94] ss:$8 sps:$4 sm:$0xff]   ;;  %v2132_v37 = vld [vmem:[#allocation8 + $0x90] ss:$8 sps:$4 sm:$0xff]   ;;  %v2133_v38 = vld [vmem:[#allocation8 + $0xa4] ss:$8 sps:$4 sm:$0xff]  }
  0x9e   :  { %516 = vmatpush1.bf16.msra.mxu1 %v2111_v18  ;;  %v2135_v39 = vld [vmem:[#allocation8 + $0xa0] ss:$8 sps:$4 sm:$0xff]   ;;  %v2136_v40 = vld [vmem:[#allocation8 + $0xb4] ss:$8 sps:$4 sm:$0xff]   ;;  %v2138_v41 = vld [vmem:[#allocation8 + $0xb0] ss:$8 sps:$4 sm:$0xff]  }
  0x9f   :  { %264 = vmatpush1.bf16.msra.mxu0 %v2089_v8  ;;  %517 = vmatprep.subr.bf16.mxu1 %v2112_v20  ;;  %v2139_v42 = vld [vmem:[#allocation8 + $0xc4] ss:$8 sps:$4 sm:$0xff]   ;;  %v2141_v43 = vld [vmem:[#allocation8 + $0xc0] ss:$8 sps:$4 sm:$0xff]   ;;  %v2142_v44 = vld [vmem:[#allocation8 + $0xd4] ss:$8 sps:$4 sm:$0xff]  }
  0xa0   :  { %265 = vmatprep.subr.bf16.mxu0 %v2090_v9  ;;  %v2144_v45 = vld [vmem:[#allocation8 + $0xd0] ss:$8 sps:$4 sm:$0xff]   ;;  %v2145_v46 = vld [vmem:[#allocation8 + $0xe4] ss:$8 sps:$4 sm:$0xff]   ;;  %v2147_v47 = vld [vmem:[#allocation8 + $0xe0] ss:$8 sps:$4 sm:$0xff]  }
  0xa1   :  { %v2148_v48 = vld [vmem:[#allocation8 + $0xf4] ss:$8 sps:$4 sm:$0xff]   ;;  %v2150_v49 = vld [vmem:[#allocation8 + $0xf0] ss:$8 sps:$4 sm:$0xff]   ;;  %v2151_v50 = vld [vmem:[#allocation10] ss:$8 sps:$4 sm:$0xff]  }
  0xa2   :  { %518 = vmatpush1.bf16.msra.mxu1 %v2114_v22  ;;  %v2153_v51 = vld [vmem:[#allocation10 + $0x4] ss:$8 sps:$4 sm:$0xff]   ;;  %v2156_v52 = vld [vmem:[#allocation10 + $0x14] ss:$8 sps:$4 sm:$0xff]   ;;  %v2154_v53 = vld [vmem:[#allocation10 + $0x10] ss:$8 sps:$4 sm:$0xff]  }
  0xa3   :  { %266 = vmatpush1.bf16.msra.mxu0 %v2092_v13  ;;  %519 = vmatprep.subr.bf16.mxu1 %v2115_v24  ;;  %v2159_v54 = vld [vmem:[#allocation10 + $0x24] ss:$8 sps:$4 sm:$0xff]   ;;  %v2157_v55 = vld [vmem:[#allocation10 + $0x20] ss:$8 sps:$4 sm:$0xff]   ;;  %v2162_v56 = vld [vmem:[#allocation10 + $0x34] ss:$8 sps:$4 sm:$0xff]  }
  0xa4   :  { %267 = vmatprep.subr.bf16.mxu0 %v2093_v15  ;;  %v2160_v57 = vld [vmem:[#allocation10 + $0x30] ss:$8 sps:$4 sm:$0xff]   ;;  %v2165_v58 = vld [vmem:[#allocation10 + $0x44] ss:$8 sps:$4 sm:$0xff]   ;;  %v2163_v59 = vld [vmem:[#allocation10 + $0x40] ss:$8 sps:$4 sm:$0xff]  }
  0xa5   :  { %v2168_v60 = vld [vmem:[#allocation10 + $0x54] ss:$8 sps:$4 sm:$0xff]   ;;  %v2166_v61 = vld [vmem:[#allocation10 + $0x50] ss:$8 sps:$4 sm:$0xff]   ;;  %v2171_v62 = vld [vmem:[#allocation10 + $0x64] ss:$8 sps:$4 sm:$0xff]  }
  0xa6   :  { %520 = vmatpush1.bf16.msra.mxu1 %v2117_v26  ;;  %v2169_v63 = vld [vmem:[#allocation10 + $0x60] ss:$8 sps:$4 sm:$0xff]   ;;  %v2174_v0 = vld [vmem:[#allocation10 + $0x74] ss:$8 sps:$4 sm:$0xff]   ;;  %v2172_v1 = vld [vmem:[#allocation10 + $0x70] ss:$8 sps:$4 sm:$0xff]  }
  0xa7   :  { %268 = vmatpush1.bf16.msra.mxu0 %v2095_v17  ;;  %521 = vmatprep.subr.bf16.mxu1 %v2118_v28  ;;  %v2177_v2 = vld [vmem:[#allocation10 + $0x84] ss:$8 sps:$4 sm:$0xff]   ;;  %v2175_v3 = vld [vmem:[#allocation10 + $0x80] ss:$8 sps:$4 sm:$0xff]   ;;  %v2180_v4 = vld [vmem:[#allocation10 + $0x94] ss:$8 sps:$4 sm:$0xff]  }
  0xa8   :  { %269 = vmatprep.subr.bf16.mxu0 %v2096_v19  ;;  %v2178_v5 = vld [vmem:[#allocation10 + $0x90] ss:$8 sps:$4 sm:$0xff]   ;;  %v2183_v6 = vld [vmem:[#allocation10 + $0xa4] ss:$8 sps:$4 sm:$0xff]   ;;  %v2181_v7 = vld [vmem:[#allocation10 + $0xa0] ss:$8 sps:$4 sm:$0xff]  }
  0xa9   :  { %v2186_v8 = vld [vmem:[#allocation10 + $0xb4] ss:$8 sps:$4 sm:$0xff]   ;;  %v2184_v9 = vld [vmem:[#allocation10 + $0xb0] ss:$8 sps:$4 sm:$0xff]   ;;  %v2189_v10 = vld [vmem:[#allocation10 + $0xc4] ss:$8 sps:$4 sm:$0xff]  }
  0xaa   :  { %522 = vmatpush1.bf16.msra.mxu1 %v2120_v29  ;;  %v2187_v11 = vld [vmem:[#allocation10 + $0xc0] ss:$8 sps:$4 sm:$0xff]   ;;  %v2192_v12 = vld [vmem:[#allocation10 + $0xd4] ss:$8 sps:$4 sm:$0xff]   ;;  %v2190_v13 = vld [vmem:[#allocation10 + $0xd0] ss:$8 sps:$4 sm:$0xff]  }
  0xab   :  { %270 = vmatpush1.bf16.msra.mxu0 %v2098_v21  ;;  %523 = vmatprep.subr.bf16.mxu1 %v2121_v30  ;;  %v2794_v15 = vshrl.u32 %v161_v14, 7  ;;  %v159_v17 = vld [vmem:[#allocation7] ss:$8 sm:$0x3]  ;;  %s2616_s16 = smov [#allocation16]  }
  0xac   :  { %271 = vmatprep.subr.bf16.mxu0 %v2099_v23  ;;  %s1835_s17 = sshll.u32 %s2616_s16, 4  ;;  %s1836_s17 = int_to_ptr.vmem [resolvable:$true] %s1835_s17 }
  0xad   :  { %v2797_v16 = vsub.s32 1, %v2794_v15  ;;  %v2800_v18 = vsub.s32 0, %v2794_v15  ;;  %p2572_p9 = scmp.lt.s32.totalorder %s1836_s17, %s1836_s17 }
  0xae   :  { %524 = vmatpush1.bf16.msra.mxu1 %v2123_v31 }
  0xaf   :  { %272 = vmatpush1.bf16.msra.mxu0 %v2101_v25  ;;  %525 = vmatprep.subr.bf16.mxu1 %v2124_v32  ;;  %v168_v19 = vrot.slane %v159_v17, %v2797_v16  ;;  %v164_v20 = vrot.slane %v159_v17, %v2800_v18 }
  0xb0   :  { %765 = vmatprep.subr.bf16.mxu0 %v2153_v51  ;;  %v2219_v51 = vld [vmem:[#allocation11 + $0x64] ss:$8 sps:$4 sm:$0xff]  }
  0xb2   :  { %290 = vmatmul.mubr.bf16.vlgmr.msra.gmra.mrb[0].mxu0 %v2102_v27  ;;  %526 = vmatpush1.bf16.msra.mxu1 %v2126_v33 }
  0xb3   :  { %527 = vmatprep.subr.bf16.mxu1 %v2127_v34  ;;  %766 = vmatpush1.bf16.msra.mxu0 %v2151_v50  ;;  %v2214_v50 = vld [vmem:[#allocation11 + $0x50] ss:$8 sps:$4 sm:$0xff]  }
  0xb4   :  { %767 = vmatprep.subr.bf16.mxu0 %v2156_v52  ;;  %v2217_v52 = vld [vmem:[#allocation11 + $0x60] ss:$8 sps:$4 sm:$0xff]  }
  0xb6   :  { %528 = vmatpush1.bf16.msra.mxu1 %v2129_v35  ;;  %v2195_v35 = vld [vmem:[#allocation10 + $0xe4] ss:$8 sps:$4 sm:$0xff]  }
  0xb7   :  { %529 = vmatprep.subr.bf16.mxu1 %v2130_v36  ;;  %768 = vmatpush1.bf16.msra.mxu0 %v2154_v53  ;;  %v2193_v36 = vld [vmem:[#allocation10 + $0xe0] ss:$8 sps:$4 sm:$0xff]   ;;  %v2222_v53 = vld [vmem:[#allocation11 + $0x74] ss:$8 sps:$4 sm:$0xff]  }
  0xb8   :  { %769 = vmatprep.subr.bf16.mxu0 %v2159_v54  ;;  %v2220_v54 = vld [vmem:[#allocation11 + $0x70] ss:$8 sps:$4 sm:$0xff]  }
  0xba   :  { %530 = vmatpush1.bf16.msra.mxu1 %v2132_v37  ;;  %v2198_v37 = vld [vmem:[#allocation10 + $0xf4] ss:$8 sps:$4 sm:$0xff]  }
  0xbb   :  { %531 = vmatprep.subr.bf16.mxu1 %v2133_v38  ;;  %770 = vmatpush1.bf16.msra.mxu0 %v2157_v55  ;;  %v2196_v38 = vld [vmem:[#allocation10 + $0xf0] ss:$8 sps:$4 sm:$0xff]   ;;  %v2225_v55 = vld [vmem:[#allocation11 + $0x84] ss:$8 sps:$4 sm:$0xff]  }
  0xbc   :  { %771 = vmatprep.subr.bf16.mxu0 %v2162_v56  ;;  %v2223_v56 = vld [vmem:[#allocation11 + $0x80] ss:$8 sps:$4 sm:$0xff]  }
  0xbe   :  { %532 = vmatpush1.bf16.msra.mxu1 %v2135_v39  ;;  %v2199_v39 = vld [vmem:[#allocation11] ss:$8 sps:$4 sm:$0xff]  }
  0xbf   :  { %533 = vmatprep.subr.bf16.mxu1 %v2136_v40  ;;  %772 = vmatpush1.bf16.msra.mxu0 %v2160_v57  ;;  %v2201_v40 = vld [vmem:[#allocation11 + $0x4] ss:$8 sps:$4 sm:$0xff]   ;;  %v2228_v57 = vld [vmem:[#allocation11 + $0x94] ss:$8 sps:$4 sm:$0xff]  }
  0xc0   :  { %773 = vmatprep.subr.bf16.mxu0 %v2165_v58  ;;  %v2226_v58 = vld [vmem:[#allocation11 + $0x90] ss:$8 sps:$4 sm:$0xff]  }
  0xc2   :  { %534 = vmatpush1.bf16.msra.mxu1 %v2138_v41  ;;  %v2204_v41 = vld [vmem:[#allocation11 + $0x14] ss:$8 sps:$4 sm:$0xff]  }
  0xc3   :  { %535 = vmatprep.subr.bf16.mxu1 %v2139_v42  ;;  %774 = vmatpush1.bf16.msra.mxu0 %v2163_v59  ;;  %v2202_v42 = vld [vmem:[#allocation11 + $0x10] ss:$8 sps:$4 sm:$0xff]   ;;  %v2231_v59 = vld [vmem:[#allocation11 + $0xa4] ss:$8 sps:$4 sm:$0xff]  }
  0xc4   :  { %775 = vmatprep.subr.bf16.mxu0 %v2168_v60  ;;  %v2229_v60 = vld [vmem:[#allocation11 + $0xa0] ss:$8 sps:$4 sm:$0xff]  }
  0xc6   :  { %536 = vmatpush1.bf16.msra.mxu1 %v2141_v43  ;;  %v2207_v43 = vld [vmem:[#allocation11 + $0x24] ss:$8 sps:$4 sm:$0xff]  }
  0xc7   :  { %537 = vmatprep.subr.bf16.mxu1 %v2142_v44  ;;  %776 = vmatpush1.bf16.msra.mxu0 %v2166_v61  ;;  %v2205_v44 = vld [vmem:[#allocation11 + $0x20] ss:$8 sps:$4 sm:$0xff]   ;;  %v2234_v61 = vld [vmem:[#allocation11 + $0xb4] ss:$8 sps:$4 sm:$0xff]  }
  0xc8   :  { %777 = vmatprep.subr.bf16.mxu0 %v2171_v62  ;;  %v2232_v62 = vld [vmem:[#allocation11 + $0xb0] ss:$8 sps:$4 sm:$0xff]  }
  0xca   :  { %538 = vmatpush1.bf16.msra.mxu1 %v2144_v45  ;;  %v2210_v45 = vld [vmem:[#allocation11 + $0x34] ss:$8 sps:$4 sm:$0xff]  }
  0xcb   :  { %539 = vmatprep.subr.bf16.mxu1 %v2145_v46  ;;  %778 = vmatpush1.bf16.msra.mxu0 %v2169_v63  ;;  %v2208_v46 = vld [vmem:[#allocation11 + $0x30] ss:$8 sps:$4 sm:$0xff]   ;;  %v2237_v63 = vld [vmem:[#allocation11 + $0xc4] ss:$8 sps:$4 sm:$0xff]  }
  0xcc   :  { %779 = vmatprep.subr.bf16.mxu0 %v2174_v0  ;;  %v2235_v0 = vld [vmem:[#allocation11 + $0xc0] ss:$8 sps:$4 sm:$0xff]  }
  0xce   :  { %540 = vmatpush1.bf16.msra.mxu1 %v2147_v47  ;;  %v2213_v47 = vld [vmem:[#allocation11 + $0x44] ss:$8 sps:$4 sm:$0xff]  }
  0xcf   :  { %541 = vmatprep.subr.bf16.mxu1 %v2148_v48  ;;  %780 = vmatpush1.bf16.msra.mxu0 %v2172_v1  ;;  %v2211_v48 = vld [vmem:[#allocation11 + $0x40] ss:$8 sps:$4 sm:$0xff]   ;;  %v339_v1 = vld [vmem:[#allocation7 + $0x1] ss:$8 sm:$0x3] }
  0xd0   :  { %781 = vmatprep.subr.bf16.mxu0 %v2177_v2  ;;  %v344_v2 = vrot.slane %v339_v1, %v2800_v18 }
  0xd2   :  { %542 = vmatpush1.bf16.msra.mxu1 %v2150_v49  ;;  %v2216_v49 = vld [vmem:[#allocation11 + $0x54] ss:$8 sps:$4 sm:$0xff]  }
  0xd3   :  { %782 = vmatpush1.bf16.msra.mxu0 %v2175_v3  ;;  %1023 = vmatprep.subr.bf16.mxu1 %v2201_v40  ;;  %v348_v3 = vrot.slane %v339_v1, %v2797_v16  ;;  %v2253_v40 = vld [vmem:[#allocation13 + $0x20] ss:$8 sps:$4 sm:$0xff]  }
  0xd4   :  { %783 = vmatprep.subr.bf16.mxu0 %v2180_v4 }
  0xd7   :  { %784 = vmatpush1.bf16.msra.mxu0 %v2178_v5 }
  0xd8   :  { %785 = vmatprep.subr.bf16.mxu0 %v2183_v6 }
  0xdb   :  { %786 = vmatpush1.bf16.msra.mxu0 %v2181_v7 }
  0xdc   :  { %787 = vmatprep.subr.bf16.mxu0 %v2186_v8 }
  0xdf   :  { %788 = vmatpush1.bf16.msra.mxu0 %v2184_v9 }
  0xe0   :  { %789 = vmatprep.subr.bf16.mxu0 %v2189_v10 }
  0xe3   :  { %790 = vmatpush1.bf16.msra.mxu0 %v2187_v11 }
  0xe4   :  { %791 = vmatprep.subr.bf16.mxu0 %v2192_v12 }
  0xe7   :  { %792 = vmatpush1.bf16.msra.mxu0 %v2190_v13 }
  0xe8   :  { %793 = vmatprep.subr.bf16.mxu0 %v2195_v35  ;;  %v2247_v35 = vld [vmem:[#allocation13] ss:$8 sps:$4 sm:$0xff]  }
  0xeb   :  { %794 = vmatpush1.bf16.msra.mxu0 %v2193_v36  ;;  %v2249_v36 = vld [vmem:[#allocation13 + $0x4] ss:$8 sps:$4 sm:$0xff]  }
  0xec   :  { %795 = vmatprep.subr.bf16.mxu0 %v2198_v37  ;;  %v2252_v37 = vld [vmem:[#allocation13 + $0x14] ss:$8 sps:$4 sm:$0xff]  }
  0xef   :  { %796 = vmatpush1.bf16.msra.mxu0 %v2196_v38  ;;  %v2250_v38 = vld [vmem:[#allocation13 + $0x10] ss:$8 sps:$4 sm:$0xff]  }
  0xf0   :  { %1277 = vmatprep.subr.bf16.mxu0 %v2249_v36  ;;  %v2321_v36 = vld [vmem:[#allocation14 + $0x84] ss:$16 sps:$4 sm:$0xff]  }
 0x185   :  { %v291_v21 = vpop.f32.mrb[0].mxu0 }
 0x186   :  { %v293_v22 = vpop.f32.mrb[1].mxu0  ;;  %v2806_v25 = vadd.f32 %v291_v21, %v164_v20  ;;  %v2240_v21 = vld [vmem:[#allocation11 + $0xd4] ss:$8 sps:$4 sm:$0xff]  }
 0x187   :  { %v2804_v23 = vadd.f32 %v293_v22, %v168_v19  ;;  %v295_v24 = vpop.f32.mrb[2].mxu0  ;;  %v2238_v22 = vld [vmem:[#allocation11 + $0xd0] ss:$8 sps:$4 sm:$0xff]  }
 0x188   :  { %v2808_v26 = vadd.f32 %v295_v24, %v164_v20  ;;  %v297_v27 = vpop.f32.mrb[3].mxu0  ;;  %v300_v32 = vmax.f32 %v2806_v25, 0.0  ;;  %v2243_v24 = vld [vmem:[#allocation11 + $0xe4] ss:$8 sps:$4 sm:$0xff]  }
 0x189   :  { %v2810_v28 = vadd.f32 %v297_v27, %v168_v19  ;;  %v301_v30 = vmax.f32 %v2804_v23, 0.0  ;;  %v2241_v27 = vld [vmem:[#allocation11 + $0xe0] ss:$8 sps:$4 sm:$0xff]   ;;  %v2297_v25 = vld [vmem:[#allocation14 + $0x4] ss:$16 sps:$4 sm:$0xff]  }
 0x18a   :  { %v302_v29 = vmax.f32 %v2808_v26, 0.0  ;;  %v2289_v23 = vld [vmem:[#allocation13 + $0xe0] ss:$8 sps:$4 sm:$0xff]  }
 0x18b   :  { %v303_v31 = vmax.f32 %v2810_v28, 0.0  ;;  %v2292_v28 = vld [vmem:[#allocation13 + $0xf0] ss:$8 sps:$4 sm:$0xff]  }
 0x18c   :  { %v304_v34 = vpack.c.bf16 %v302_v29, %v300_v32 }
 0x18d   :  { %v305_v33 = vpack.c.bf16 %v303_v31, %v301_v30 }
 0x18f   :  { %543 = vmatprep.mubr.bf16.mxu1 %v305_v33  ;;  %v2246_v33 = vld [vmem:[#allocation11 + $0xf4] ss:$8 sps:$4 sm:$0xff]  }
 0x190   :  { %544 = vmatmul.mubr.bf16.vlgmr.msra.gmra.mrb[0].mxu1 %v304_v34  ;;  %v2244_v34 = vld [vmem:[#allocation11 + $0xf0] ss:$8 sps:$4 sm:$0xff]  }
 0x191   :  { %1024 = vmatpush1.bf16.msra.mxu1 %v2199_v39  ;;  %v2255_v39 = vld [vmem:[#allocation13 + $0x24] ss:$8 sps:$4 sm:$0xff]  }
 0x192   :  { %1025 = vmatprep.subr.bf16.mxu1 %v2204_v41  ;;  %v2258_v41 = vld [vmem:[#allocation13 + $0x34] ss:$8 sps:$4 sm:$0xff]  }
 0x195   :  { %1026 = vmatpush1.bf16.msra.mxu1 %v2202_v42  ;;  %v2256_v42 = vld [vmem:[#allocation13 + $0x30] ss:$8 sps:$4 sm:$0xff]  }
 0x196   :  { %1027 = vmatprep.subr.bf16.mxu1 %v2207_v43  ;;  %v2261_v43 = vld [vmem:[#allocation13 + $0x44] ss:$8 sps:$4 sm:$0xff]  }
 0x199   :  { %1028 = vmatpush1.bf16.msra.mxu1 %v2205_v44  ;;  %v2259_v44 = vld [vmem:[#allocation13 + $0x40] ss:$8 sps:$4 sm:$0xff]  }
 0x19a   :  { %1029 = vmatprep.subr.bf16.mxu1 %v2210_v45  ;;  %v2264_v45 = vld [vmem:[#allocation13 + $0x54] ss:$8 sps:$4 sm:$0xff]  }
 0x19d   :  { %1030 = vmatpush1.bf16.msra.mxu1 %v2208_v46  ;;  %v2262_v46 = vld [vmem:[#allocation13 + $0x50] ss:$8 sps:$4 sm:$0xff]  }
 0x19e   :  { %1031 = vmatprep.subr.bf16.mxu1 %v2213_v47  ;;  %v2267_v47 = vld [vmem:[#allocation13 + $0x64] ss:$8 sps:$4 sm:$0xff]  }
 0x1a1   :  { %1032 = vmatpush1.bf16.msra.mxu1 %v2211_v48  ;;  %v2265_v48 = vld [vmem:[#allocation13 + $0x60] ss:$8 sps:$4 sm:$0xff]  }
 0x1a2   :  { %1033 = vmatprep.subr.bf16.mxu1 %v2216_v49  ;;  %v2270_v49 = vld [vmem:[#allocation13 + $0x74] ss:$8 sps:$4 sm:$0xff]  }
 0x1a5   :  { %1034 = vmatpush1.bf16.msra.mxu1 %v2214_v50  ;;  %v2268_v50 = vld [vmem:[#allocation13 + $0x70] ss:$8 sps:$4 sm:$0xff]  }
 0x1a6   :  { %1035 = vmatprep.subr.bf16.mxu1 %v2219_v51  ;;  %v2273_v51 = vld [vmem:[#allocation13 + $0x84] ss:$8 sps:$4 sm:$0xff]  }
 0x1a9   :  { %1036 = vmatpush1.bf16.msra.mxu1 %v2217_v52  ;;  %v2271_v52 = vld [vmem:[#allocation13 + $0x80] ss:$8 sps:$4 sm:$0xff]  }
 0x1aa   :  { %1037 = vmatprep.subr.bf16.mxu1 %v2222_v53  ;;  %v2276_v53 = vld [vmem:[#allocation13 + $0x94] ss:$8 sps:$4 sm:$0xff]  }
 0x1ad   :  { %1038 = vmatpush1.bf16.msra.mxu1 %v2220_v54  ;;  %v2274_v54 = vld [vmem:[#allocation13 + $0x90] ss:$8 sps:$4 sm:$0xff]  }
 0x1ae   :  { %1039 = vmatprep.subr.bf16.mxu1 %v2225_v55  ;;  %v2279_v55 = vld [vmem:[#allocation13 + $0xa4] ss:$8 sps:$4 sm:$0xff]  }
 0x1b1   :  { %1040 = vmatpush1.bf16.msra.mxu1 %v2223_v56  ;;  %v2277_v56 = vld [vmem:[#allocation13 + $0xa0] ss:$8 sps:$4 sm:$0xff]  }
 0x1b2   :  { %1041 = vmatprep.subr.bf16.mxu1 %v2228_v57  ;;  %v2282_v57 = vld [vmem:[#allocation13 + $0xb4] ss:$8 sps:$4 sm:$0xff]  }
 0x1b5   :  { %1042 = vmatpush1.bf16.msra.mxu1 %v2226_v58  ;;  %v2280_v58 = vld [vmem:[#allocation13 + $0xb0] ss:$8 sps:$4 sm:$0xff]  }
 0x1b6   :  { %1043 = vmatprep.subr.bf16.mxu1 %v2231_v59  ;;  %v2285_v59 = vld [vmem:[#allocation13 + $0xc4] ss:$8 sps:$4 sm:$0xff]  }
 0x1b9   :  { %1044 = vmatpush1.bf16.msra.mxu1 %v2229_v60  ;;  %v2283_v60 = vld [vmem:[#allocation13 + $0xc0] ss:$8 sps:$4 sm:$0xff]  }
 0x1ba   :  { %1045 = vmatprep.subr.bf16.mxu1 %v2234_v61  ;;  %v2288_v61 = vld [vmem:[#allocation13 + $0xd4] ss:$8 sps:$4 sm:$0xff]  }
 0x1bd   :  { %1046 = vmatpush1.bf16.msra.mxu1 %v2232_v62  ;;  %v2286_v62 = vld [vmem:[#allocation13 + $0xd0] ss:$8 sps:$4 sm:$0xff]  }
 0x1be   :  { %1047 = vmatprep.subr.bf16.mxu1 %v2237_v63  ;;  %v593_v63 = vld [vmem:[#allocation7 + $0x2] ss:$8 sm:$0x3] }
 0x1bf   :  { %v602_v1 = vrot.slane %v593_v63, %v2797_v16 }
 0x1c1   :  { %1048 = vmatpush1.bf16.msra.mxu1 %v2235_v0  ;;  %v598_v0 = vrot.slane %v593_v63, %v2800_v18 }
 0x1c2   :  { %1049 = vmatprep.subr.bf16.mxu1 %v2240_v21 }
 0x1c5   :  { %1050 = vmatpush1.bf16.msra.mxu1 %v2238_v22  ;;  %v2303_v22 = vld [vmem:[#allocation14 + $0x24] ss:$16 sps:$4 sm:$0xff]  }
 0x1c6   :  { %1051 = vmatprep.subr.bf16.mxu1 %v2243_v24  ;;  %v2301_v24 = vld [vmem:[#allocation14 + $0x20] ss:$16 sps:$4 sm:$0xff]  }
 0x1c9   :  { %1052 = vmatpush1.bf16.msra.mxu1 %v2241_v27  ;;  %v2309_v27 = vld [vmem:[#allocation14 + $0x44] ss:$16 sps:$4 sm:$0xff]  }
 0x1ca   :  { %1053 = vmatprep.subr.bf16.mxu1 %v2246_v33  ;;  %v2307_v33 = vld [vmem:[#allocation14 + $0x40] ss:$16 sps:$4 sm:$0xff]  }
 0x1cd   :  { %1054 = vmatpush1.bf16.msra.mxu1 %v2244_v34  ;;  %v2315_v34 = vld [vmem:[#allocation14 + $0x64] ss:$16 sps:$4 sm:$0xff]  }
 0x1ce   :  { %1736 = vmatprep.subr.bf16.mxu1 %v2297_v25  ;;  %v2340_v25 = vld [vmem:[#allocation14 + $0xe8] ss:$16 sps:$4 sm:$0xff]  }
 0x263   :  { %v545_v4 = vpop.f32.mrb[0].mxu1 }
 0x264   :  { %v546_v5 = vadd.f32 %v545_v4, %v344_v2  ;;  %v547_v6 = vpop.f32.mrb[1].mxu1 }
 0x265   :  { %v548_v7 = vadd.f32 %v547_v6, %v348_v3  ;;  %v549_v8 = vpop.f32.mrb[2].mxu1 }
 0x266   :  { %v550_v9 = vadd.f32 %v549_v8, %v344_v2  ;;  %v551_v10 = vpop.f32.mrb[3].mxu1  ;;  %v554_v12 = vmax.f32 %v546_v5, 0.0 }
 0x267   :  { %v552_v11 = vadd.f32 %v551_v10, %v348_v3  ;;  %v555_v14 = vmax.f32 %v548_v7, 0.0 }
 0x268   :  { %v556_v13 = vmax.f32 %v550_v9, 0.0 }
 0x269   :  { %v557_v17 = vmax.f32 %v552_v11, 0.0 }
 0x26a   :  { %v558_v19 = vpack.c.bf16 %v556_v13, %v554_v12 }
 0x26b   :  { %v559_v20 = vpack.c.bf16 %v557_v17, %v555_v14 }
 0x26d   :  { %797 = vmatprep.mubr.bf16.mxu0 %v559_v20 }
 0x26e   :  { %798 = vmatmul.mubr.bf16.vlgmr.msra.gmra.mrb[4].mxu0 %v558_v19 }
 0x26f   :  { %1278 = vmatpush1.bf16.msra.mxu0 %v2247_v35  ;;  %v2313_v35 = vld [vmem:[#allocation14 + $0x60] ss:$16 sps:$4 sm:$0xff]  }
 0x270   :  { %1279 = vmatprep.subr.bf16.mxu0 %v2252_v37  ;;  %v2319_v37 = vld [vmem:[#allocation14 + $0x80] ss:$16 sps:$4 sm:$0xff]  }
 0x273   :  { %1280 = vmatpush1.bf16.msra.mxu0 %v2250_v38  ;;  %v2327_v38 = vld [vmem:[#allocation14 + $0xa4] ss:$16 sps:$4 sm:$0xff]  }
 0x274   :  { %1281 = vmatprep.subr.bf16.mxu0 %v2255_v39  ;;  %v2325_v39 = vld [vmem:[#allocation14 + $0xa0] ss:$16 sps:$4 sm:$0xff]  }
 0x277   :  { %1282 = vmatpush1.bf16.msra.mxu0 %v2253_v40  ;;  %v2333_v40 = vld [vmem:[#allocation14 + $0xc4] ss:$16 sps:$4 sm:$0xff]  }
 0x278   :  { %1283 = vmatprep.subr.bf16.mxu0 %v2258_v41  ;;  %v2331_v41 = vld [vmem:[#allocation14 + $0xc0] ss:$16 sps:$4 sm:$0xff]  }
 0x27b   :  { %1284 = vmatpush1.bf16.msra.mxu0 %v2256_v42  ;;  %v2339_v42 = vld [vmem:[#allocation14 + $0xe4] ss:$16 sps:$4 sm:$0xff]  }
 0x27c   :  { %1285 = vmatprep.subr.bf16.mxu0 %v2261_v43  ;;  %v2337_v43 = vld [vmem:[#allocation14 + $0xe0] ss:$16 sps:$4 sm:$0xff]  }
 0x27f   :  { %1286 = vmatpush1.bf16.msra.mxu0 %v2259_v44  ;;  %v2345_v44 = vld [vmem:[#allocation14 + $0x104] ss:$16 sps:$4 sm:$0xff]  }
 0x280   :  { %1287 = vmatprep.subr.bf16.mxu0 %v2264_v45  ;;  %v2343_v45 = vld [vmem:[#allocation14 + $0x100] ss:$16 sps:$4 sm:$0xff]  }
 0x283   :  { %1288 = vmatpush1.bf16.msra.mxu0 %v2262_v46  ;;  %v2351_v46 = vld [vmem:[#allocation14 + $0x124] ss:$16 sps:$4 sm:$0xff]  }
 0x284   :  { %1289 = vmatprep.subr.bf16.mxu0 %v2267_v47  ;;  %v2349_v47 = vld [vmem:[#allocation14 + $0x120] ss:$16 sps:$4 sm:$0xff]  }
 0x287   :  { %1290 = vmatpush1.bf16.msra.mxu0 %v2265_v48  ;;  %v2357_v48 = vld [vmem:[#allocation14 + $0x144] ss:$16 sps:$4 sm:$0xff]  }
 0x288   :  { %1291 = vmatprep.subr.bf16.mxu0 %v2270_v49  ;;  %v2355_v49 = vld [vmem:[#allocation14 + $0x140] ss:$16 sps:$4 sm:$0xff]  }
 0x28b   :  { %1292 = vmatpush1.bf16.msra.mxu0 %v2268_v50  ;;  %v2363_v50 = vld [vmem:[#allocation14 + $0x164] ss:$16 sps:$4 sm:$0xff]  }
 0x28c   :  { %1293 = vmatprep.subr.bf16.mxu0 %v2273_v51  ;;  %v2361_v51 = vld [vmem:[#allocation14 + $0x160] ss:$16 sps:$4 sm:$0xff]  }
 0x28f   :  { %1294 = vmatpush1.bf16.msra.mxu0 %v2271_v52  ;;  %v2369_v52 = vld [vmem:[#allocation14 + $0x184] ss:$16 sps:$4 sm:$0xff]  }
 0x290   :  { %1295 = vmatprep.subr.bf16.mxu0 %v2276_v53  ;;  %v2367_v53 = vld [vmem:[#allocation14 + $0x180] ss:$16 sps:$4 sm:$0xff]  }
 0x293   :  { %1296 = vmatpush1.bf16.msra.mxu0 %v2274_v54  ;;  %v851_v54 = vld [vmem:[#allocation7 + $0x3] ss:$8 sm:$0x3] }
 0x294   :  { %1297 = vmatprep.subr.bf16.mxu0 %v2279_v55  ;;  %v856_v55 = vrot.slane %v851_v54, %v2800_v18 }
 0x297   :  { %1298 = vmatpush1.bf16.msra.mxu0 %v2277_v56  ;;  %v860_v56 = vrot.slane %v851_v54, %v2797_v16 }
 0x298   :  { %1299 = vmatprep.subr.bf16.mxu0 %v2282_v57 }
 0x29b   :  { %1300 = vmatpush1.bf16.msra.mxu0 %v2280_v58 }
 0x29c   :  { %1301 = vmatprep.subr.bf16.mxu0 %v2285_v59 }
 0x29f   :  { %1302 = vmatpush1.bf16.msra.mxu0 %v2283_v60 }
 0x2a0   :  { %1303 = vmatprep.subr.bf16.mxu0 %v2288_v61 }
 0x2a3   :  { %1304 = vmatpush1.bf16.msra.mxu0 %v2286_v62 }
 0x341   :  { %v799_v2 = vpop.f32.mrb[4].mxu0 }
 0x342   :  { %v800_v3 = vadd.f32 %v799_v2, %v598_v0  ;;  %v801_v4 = vpop.f32.mrb[5].mxu0 }
 0x343   :  { %v802_v5 = vadd.f32 %v801_v4, %v602_v1  ;;  %v803_v6 = vpop.f32.mrb[6].mxu0 }
 0x344   :  { %v804_v7 = vadd.f32 %v803_v6, %v598_v0  ;;  %v805_v8 = vpop.f32.mrb[7].mxu0  ;;  %v808_v11 = vmax.f32 %v800_v3, 0.0 }
 0x345   :  { %v809_v9 = vmax.f32 %v802_v5, 0.0  ;;  %v806_v10 = vadd.f32 %v805_v8, %v602_v1  ;;  %v2306_v8 = vld [vmem:[#allocation14 + $0x2c] ss:$16 sps:$4 sm:$0xff]  }
 0x346   :  { %v810_v12 = vmax.f32 %v804_v7, 0.0  ;;  %v2842_v20 = vadd.f32 %v808_v11, %v300_v32  ;;  %v2300_v32 = vld [vmem:[#allocation14 + $0xc] ss:$16 sps:$4 sm:$0xff]   ;;  %v2298_v7 = vld [vmem:[#allocation14 + $0x8] ss:$16 sps:$4 sm:$0xff]  }
 0x347   :  { %v811_v13 = vmax.f32 %v806_v10, 0.0  ;;  %v2834_v17 = vadd.f32 %v809_v9, %v301_v30  ;;  %v2294_v30 = vld [vmem:[#allocation13 + $0xf4] ss:$8 sps:$4 sm:$0xff]   ;;  %v2304_v9 = vld [vmem:[#allocation14 + $0x28] ss:$16 sps:$4 sm:$0xff]  }
 0x348   :  { %v2830_v14 = vadd.f32 %v810_v12, %v302_v29  ;;  %v2291_v29 = vld [vmem:[#allocation13 + $0xe4] ss:$8 sps:$4 sm:$0xff]   ;;  %v2310_v11 = vld [vmem:[#allocation14 + $0x48] ss:$16 sps:$4 sm:$0xff]  }
 0x349   :  { %v2838_v19 = vadd.f32 %v811_v13, %v303_v31  ;;  %1305 = vmatprep.subr.bf16.mxu0 %v2291_v29  ;;  %v2295_v31 = vld [vmem:[#allocation14] ss:$16 sps:$4 sm:$0xff]   ;;  %v2312_v10 = vld [vmem:[#allocation14 + $0x4c] ss:$16 sps:$4 sm:$0xff]   ;;  %v2316_v13 = vld [vmem:[#allocation14 + $0x68] ss:$16 sps:$4 sm:$0xff]  }
 0x34a   :  { %v816_v26 = vpack.c.bf16 %v2830_v14, %v2842_v20  ;;  %1306 = vmatpush1.bf16.msra.mxu0 %v2289_v23  ;;  %v2318_v12 = vld [vmem:[#allocation14 + $0x6c] ss:$16 sps:$4 sm:$0xff]   ;;  %v2328_v23 = vld [vmem:[#allocation14 + $0xa8] ss:$16 sps:$4 sm:$0xff]  }
 0x34b   :  { %v817_v21 = vpack.c.bf16 %v2838_v19, %v2834_v17  ;;  %1307 = vmatprep.subr.bf16.mxu0 %v2294_v30  ;;  %v2330_v29 = vld [vmem:[#allocation14 + $0xac] ss:$16 sps:$4 sm:$0xff]  }
 0x34c   :  { %v2336_v30 = vld [vmem:[#allocation14 + $0xcc] ss:$16 sps:$4 sm:$0xff]  }
 0x34d   :  { %1055 = vmatprep.mubr.bf16.mxu1 %v817_v21  ;;  %v2324_v21 = vld [vmem:[#allocation14 + $0x8c] ss:$16 sps:$4 sm:$0xff]  }
 0x34e   :  { %1056 = vmatmul.mubr.bf16.vlgmr.msra.gmra.mrb[4].mxu1 %v816_v26  ;;  %1308 = vmatpush1.bf16.msra.mxu0 %v2292_v28  ;;  %v2322_v26 = vld [vmem:[#allocation14 + $0x88] ss:$16 sps:$4 sm:$0xff]  }
 0x34f   :  { %1779 = vmatprep.subr.bf16.mxu0 %v2300_v32  ;;  %1737 = vmatpush1.bf16.msra.mxu1 %v2295_v31  ;;  %v2334_v28 = vld [vmem:[#allocation14 + $0xc8] ss:$16 sps:$4 sm:$0xff]   ;;  %v2342_v31 = vld [vmem:[#allocation14 + $0xec] ss:$16 sps:$4 sm:$0xff]  }
 0x350   :  { %1738 = vmatprep.subr.bf16.mxu1 %v2303_v22  ;;  %v2348_v32 = vld [vmem:[#allocation14 + $0x10c] ss:$16 sps:$4 sm:$0xff]   ;;  %v2346_v22 = vld [vmem:[#allocation14 + $0x108] ss:$16 sps:$4 sm:$0xff]  }
 0x353   :  { %1739 = vmatpush1.bf16.msra.mxu1 %v2301_v24  ;;  %v2354_v24 = vld [vmem:[#allocation14 + $0x12c] ss:$16 sps:$4 sm:$0xff]  }
 0x354   :  { %1740 = vmatprep.subr.bf16.mxu1 %v2309_v27  ;;  %v2352_v27 = vld [vmem:[#allocation14 + $0x128] ss:$16 sps:$4 sm:$0xff]  }
 0x357   :  { %1741 = vmatpush1.bf16.msra.mxu1 %v2307_v33  ;;  %v2360_v33 = vld [vmem:[#allocation14 + $0x14c] ss:$16 sps:$4 sm:$0xff]  }
 0x358   :  { %1742 = vmatprep.subr.bf16.mxu1 %v2315_v34  ;;  %v2358_v34 = vld [vmem:[#allocation14 + $0x148] ss:$16 sps:$4 sm:$0xff]  }
 0x35b   :  { %1743 = vmatpush1.bf16.msra.mxu1 %v2313_v35  ;;  %v2366_v35 = vld [vmem:[#allocation14 + $0x16c] ss:$16 sps:$4 sm:$0xff]  }
 0x35c   :  { %1744 = vmatprep.subr.bf16.mxu1 %v2321_v36  ;;  %v2364_v36 = vld [vmem:[#allocation14 + $0x168] ss:$16 sps:$4 sm:$0xff]  }
 0x35f   :  { %1745 = vmatpush1.bf16.msra.mxu1 %v2319_v37  ;;  %v2372_v37 = vld [vmem:[#allocation14 + $0x18c] ss:$16 sps:$4 sm:$0xff]  }
 0x360   :  { %1746 = vmatprep.subr.bf16.mxu1 %v2327_v38  ;;  %v2370_v38 = vld [vmem:[#allocation14 + $0x188] ss:$16 sps:$4 sm:$0xff]  }
 0x363   :  { %1747 = vmatpush1.bf16.msra.mxu1 %v2325_v39  ;;  %v2375_v39 = vld [vmem:[#allocation14 + $0x1a4] ss:$16 sps:$4 sm:$0xff]  }
 0x364   :  { %1748 = vmatprep.subr.bf16.mxu1 %v2333_v40  ;;  %v2378_v40 = vld [vmem:[#allocation14 + $0x1ac] ss:$16 sps:$4 sm:$0xff]  }
 0x367   :  { %1749 = vmatpush1.bf16.msra.mxu1 %v2331_v41  ;;  %v2373_v41 = vld [vmem:[#allocation14 + $0x1a0] ss:$16 sps:$4 sm:$0xff]  }
 0x368   :  { %1750 = vmatprep.subr.bf16.mxu1 %v2339_v42  ;;  %v2376_v42 = vld [vmem:[#allocation14 + $0x1a8] ss:$16 sps:$4 sm:$0xff]  }
 0x36b   :  { %1751 = vmatpush1.bf16.msra.mxu1 %v2337_v43  ;;  %v2381_v43 = vld [vmem:[#allocation14 + $0x1c4] ss:$16 sps:$4 sm:$0xff]  }
 0x36c   :  { %1752 = vmatprep.subr.bf16.mxu1 %v2345_v44  ;;  %v2384_v44 = vld [vmem:[#allocation14 + $0x1cc] ss:$16 sps:$4 sm:$0xff]  }
 0x36f   :  { %1753 = vmatpush1.bf16.msra.mxu1 %v2343_v45  ;;  %v2379_v45 = vld [vmem:[#allocation14 + $0x1c0] ss:$16 sps:$4 sm:$0xff]  }
 0x370   :  { %1754 = vmatprep.subr.bf16.mxu1 %v2351_v46  ;;  %v2382_v46 = vld [vmem:[#allocation14 + $0x1c8] ss:$16 sps:$4 sm:$0xff]  }
 0x373   :  { %1755 = vmatpush1.bf16.msra.mxu1 %v2349_v47  ;;  %v2387_v47 = vld [vmem:[#allocation14 + $0x1e4] ss:$16 sps:$4 sm:$0xff]  }
 0x374   :  { %1756 = vmatprep.subr.bf16.mxu1 %v2357_v48  ;;  %v2390_v48 = vld [vmem:[#allocation14 + $0x1ec] ss:$16 sps:$4 sm:$0xff]  }
 0x377   :  { %1757 = vmatpush1.bf16.msra.mxu1 %v2355_v49  ;;  %v2385_v49 = vld [vmem:[#allocation14 + $0x1e0] ss:$16 sps:$4 sm:$0xff]  }
 0x378   :  { %1758 = vmatprep.subr.bf16.mxu1 %v2363_v50  ;;  %v2388_v50 = vld [vmem:[#allocation14 + $0x1e8] ss:$16 sps:$4 sm:$0xff]  }
 0x37b   :  { %1759 = vmatpush1.bf16.msra.mxu1 %v2361_v51  ;;  %v1105_v51 = vld [vmem:[#allocation7 + $0x4] ss:$8 sm:$0x3] }
 0x37c   :  { %1760 = vmatprep.subr.bf16.mxu1 %v2369_v52  ;;  %v1110_v52 = vrot.slane %v1105_v51, %v2800_v18 }
 0x37f   :  { %1761 = vmatpush1.bf16.msra.mxu1 %v2367_v53  ;;  %v1114_v53 = vrot.slane %v1105_v51, %v2797_v16 }
 0x380   :  { %1762 = vmatprep.subr.bf16.mxu1 %v2375_v39 }
 0x383   :  { %1763 = vmatpush1.bf16.msra.mxu1 %v2373_v41 }
 0x384   :  { %1764 = vmatprep.subr.bf16.mxu1 %v2381_v43 }
 0x387   :  { %1765 = vmatpush1.bf16.msra.mxu1 %v2379_v45 }
 0x388   :  { %1766 = vmatprep.subr.bf16.mxu1 %v2387_v47 }
 0x38b   :  { %1767 = vmatpush1.bf16.msra.mxu1 %v2385_v49 }
 0x421   :  { %v1057_v57 = vpop.f32.mrb[4].mxu1 }
 0x422   :  { %v1058_v58 = vadd.f32 %v1057_v57, %v856_v55  ;;  %v1059_v59 = vpop.f32.mrb[5].mxu1 }
 0x423   :  { %v1060_v60 = vadd.f32 %v1059_v59, %v860_v56  ;;  %v1061_v61 = vpop.f32.mrb[6].mxu1 }
 0x424   :  { %v1062_v62 = vadd.f32 %v1061_v61, %v856_v55  ;;  %v1063_v63 = vpop.f32.mrb[7].mxu1  ;;  %v1066_v1 = vmax.f32 %v1058_v58, 0.0 }
 0x425   :  { %v1064_v0 = vadd.f32 %v1063_v63, %v860_v56  ;;  %v1067_v3 = vmax.f32 %v1060_v60, 0.0 }
 0x426   :  { %v1068_v2 = vmax.f32 %v1062_v62, 0.0 }
 0x427   :  { %v1069_v4 = vmax.f32 %v1064_v0, 0.0 }
 0x428   :  { %v1070_v5 = vpack.c.bf16 %v1068_v2, %v1066_v1 }
 0x429   :  { %v1071_v6 = vpack.c.bf16 %v1069_v4, %v1067_v3 }
 0x42b   :  { %1309 = vmatprep.mubr.bf16.mxu0 %v1071_v6 }
 0x42c   :  { %1310 = vmatmul.mubr.bf16.vlgmr.msra.gmra.mrb[8].mxu0 %v1070_v5 }
 0x42d   :  { %1780 = vmatpush1.bf16.msra.mxu0 %v2298_v7 }
 0x42e   :  { %1781 = vmatprep.subr.bf16.mxu0 %v2306_v8  ;;  %v1406_v8 = vsub.s32 2, %v2794_v15 }
 0x431   :  { %1782 = vmatpush1.bf16.msra.mxu0 %v2304_v9  ;;  %v1394_v9 = vld [vmem:[%s2883_s8] sm:$0xf]  ;;  %s2567_s8 = scalar_lea.vmem %s1836_s17, 1024 }
 0x432   :  { %1783 = vmatprep.subr.bf16.mxu0 %v2312_v10  ;;  %v1407_v10 = vrot.slane %v1394_v9, %v1406_v8  ;;  %p2568_p8 = scmp.ne.s32.totalorder %s1836_s17, %s2567_s8  ;;  %p2573_p10 = scmp.lt.s32.totalorder %s2567_s8, %s2567_s8 }
 0x434   :  { %p2574_p11 = por %p2573_p10, %p2572_p9 }
 0x435   :  { %1784 = vmatpush1.bf16.msra.mxu0 %v2310_v11 }
 0x436   :  { %1785 = vmatprep.subr.bf16.mxu0 %v2318_v12  ;;  %p2575_p12 = pnand %p2574_p11, %p2568_p8 }
 0x439   :  { %1786 = vmatpush1.bf16.msra.mxu0 %v2316_v13 }
 0x43a   :  { %1787 = vmatprep.subr.bf16.mxu0 %v2324_v21 }
 0x43d   :  { %1788 = vmatpush1.bf16.msra.mxu0 %v2322_v26 }
 0x43e   :  { %1789 = vmatprep.subr.bf16.mxu0 %v2330_v29 }
 0x441   :  { %1790 = vmatpush1.bf16.msra.mxu0 %v2328_v23 }
 0x442   :  { %1791 = vmatprep.subr.bf16.mxu0 %v2336_v30 }
 0x445   :  { %1792 = vmatpush1.bf16.msra.mxu0 %v2334_v28 }
 0x446   :  { %1793 = vmatprep.subr.bf16.mxu0 %v2342_v31 }
 0x449   :  { %1794 = vmatpush1.bf16.msra.mxu0 %v2340_v25 }
 0x44a   :  { %1795 = vmatprep.subr.bf16.mxu0 %v2348_v32 }
 0x44d   :  { %1796 = vmatpush1.bf16.msra.mxu0 %v2346_v22 }
 0x44e   :  { %1797 = vmatprep.subr.bf16.mxu0 %v2354_v24 }
 0x451   :  { %1798 = vmatpush1.bf16.msra.mxu0 %v2352_v27 }
 0x452   :  { %1799 = vmatprep.subr.bf16.mxu0 %v2360_v33 }
 0x455   :  { %1800 = vmatpush1.bf16.msra.mxu0 %v2358_v34 }
 0x456   :  { %1801 = vmatprep.subr.bf16.mxu0 %v2366_v35 }
 0x459   :  { %1802 = vmatpush1.bf16.msra.mxu0 %v2364_v36 }
 0x45a   :  { %1803 = vmatprep.subr.bf16.mxu0 %v2372_v37 }
 0x45d   :  { %1804 = vmatpush1.bf16.msra.mxu0 %v2370_v38 }
 0x45e   :  { %1805 = vmatprep.subr.bf16.mxu0 %v2378_v40 }
 0x461   :  { %1806 = vmatpush1.bf16.msra.mxu0 %v2376_v42 }
 0x462   :  { %1807 = vmatprep.subr.bf16.mxu0 %v2384_v44 }
 0x465   :  { %1808 = vmatpush1.bf16.msra.mxu0 %v2382_v46 }
 0x466   :  { %1809 = vmatprep.subr.bf16.mxu0 %v2390_v48 }
 0x469   :  { %1810 = vmatpush1.bf16.msra.mxu0 %v2388_v50 }
 0x4ff   :  { %v1311_v54 = vpop.f32.mrb[8].mxu0 }
 0x500   :  { %v1312_v55 = vadd.f32 %v1311_v54, %v1110_v52  ;;  %v1313_v56 = vpop.f32.mrb[9].mxu0 }
 0x501   :  { %v1314_v57 = vadd.f32 %v1313_v56, %v1114_v53  ;;  %v1315_v58 = vpop.f32.mrb[10].mxu0 }
 0x502   :  { %v1320_v59 = vmax.f32 %v1312_v55, 0.0  ;;  %v1316_v60 = vadd.f32 %v1315_v58, %v1110_v52  ;;  %v1317_v61 = vpop.f32.mrb[11].mxu0 }
 0x503   :  { %v1321_v62 = vmax.f32 %v1314_v57, 0.0  ;;  %v1318_v63 = vadd.f32 %v1317_v61, %v1114_v53 }
 0x504   :  { %v1322_v0 = vmax.f32 %v1316_v60, 0.0  ;;  %v1324_v2 = vadd.f32 %v1320_v59, %v2842_v20  ;;  %v1410_v20 = vsub.s32 3, %v2794_v15 }
 0x505   :  { %v1323_v1 = vmax.f32 %v1318_v63, 0.0  ;;  %v1325_v4 = vadd.f32 %v1321_v62, %v2834_v17  ;;  %v1403_v17 = vrot.slane %v1394_v9, %v2797_v16 }
 0x506   :  { %v1326_v3 = vadd.f32 %v1322_v0, %v2830_v14  ;;  %v1399_v14 = vrot.slane %v1394_v9, %v2800_v18 }
 0x507   :  { %v1327_v5 = vadd.f32 %v1323_v1, %v2838_v19  ;;  %v1411_v19 = vrot.slane %v1394_v9, %v1410_v20 }
 0x508   :  { %v1328_v6 = vpack.c.bf16 %v1326_v3, %v1324_v2 }
 0x509   :  { %v1329_v7 = vpack.c.bf16 %v1327_v5, %v1325_v4 }
 0x50b   :  { %1768 = vmatprep.mubr.bf16.mxu1 %v1329_v7  ;;  %1811 = vmatprep.mubr.bf16.mxu0 %v1329_v7 }
 0x50c   :  { %1769 = vmatmul.mubr.bf16.vlgmr.msra.gmra.mrb[8].mxu1 %v1328_v6  ;;  %1812 = vmatmul.mubr.bf16.vlgmr.msra.gmra.mrb[12].mxu0 %v1328_v6 }
 0x5df   :  { %v1770_v11 = vpop.f32.mrb[8].mxu1  ;;  %v1813_v12 = vpop.f32.mrb[12].mxu0 }
 0x5e0   :  { %v1771_v13 = vadd.f32 %v1770_v11, %v1399_v14  ;;  %v1814_v21 = vadd.f32 %v1813_v12, %v1407_v10  ;;  %v1772_v26 = vpop.f32.mrb[9].mxu1  ;;  %v1815_v29 = vpop.f32.mrb[13].mxu0 }
 0x5e1   :  { %v1773_v23 = vadd.f32 %v1772_v26, %v1403_v17  ;;  %v1816_v30 = vadd.f32 %v1815_v29, %v1411_v19  ;;  %v1774_v28 = vpop.f32.mrb[10].mxu1  ;;  %v1817_v31 = vpop.f32.mrb[14].mxu0 }
 0x5e2   :  { %1822 = vst [vmem:[#allocation16] sm:$0xff] %v1771_v13  ;;  %1824 = vst [vmem:[#allocation16 + $0x10] sm:$0xff] %v1814_v21  ;;  %v1775_v15 = vadd.f32 %v1774_v28, %v1399_v14  ;;  %v1818_v18 = vadd.f32 %v1817_v31, %v1407_v10  ;;  %v1776_v25 = vpop.f32.mrb[11].mxu1  ;;  %v1819_v32 = vpop.f32.mrb[15].mxu0 }
 0x5e3   :  { %1823 = vst [vmem:[#allocation16 + $0x8] sm:$0xff] %v1773_v23  ;;  %1825 = vst [vmem:[#allocation16 + $0x18] sm:$0xff] %v1816_v30  ;;  %v1777_v16 = vadd.f32 %v1776_v25, %v1403_v17  ;;  %v1820_v22 = vadd.f32 %v1819_v32, %v1411_v19 }
 0x5e4   :  { %1826 = vst [vmem:[#allocation16 + $0x20] sm:$0xff] %v1775_v15  ;;  %1828 = vst [vmem:[#allocation16 + $0x30] sm:$0xff] %v1818_v18 }
 0x5e5   :  { %1827 = vst [vmem:[#allocation16 + $0x28] sm:$0xff] %v1777_v16  ;;  %1829 = vst [vmem:[#allocation16 + $0x38] sm:$0xff] %v1820_v22 }
 0x5e6   :  { %2578 = shalt.err (!%p2575_p12)
}
 0x5e7   :  { %s2579_s23 = scalar_lea.hbm %s2884_s9, 1024 }
 0x5e8   :  { %p2580_p13 = scmp.ne.s32.totalorder %s2884_s9, %s2579_s23  ;;  %p2583_p0 = scmp.lt.u32.totalorder %s2579_s23, %s2884_s9 }
 0x5ea   :  { %p2585_p1 = pnand %p2583_p0, %p2580_p13 }
 0x5ec   :  { %2588 = shalt.err (!%p2585_p1)
}
 0x5ed   :  { %s2617_s29 = smov 512   ;;  %s2618_s30 = smov 32  }
 0x5ee   :  { %1841 = dma.vmem_to_hbm [thread:$0]  %s1836_s17, 1024, %s2884_s9, [#allocation4], %s2617_s29, %s2617_s29, %s2618_s30  }
 0x5ef   :  { %2599 = dma.done.wait [#allocation4], 1024  }
 0x5f0   :  { %2600 = vsyncadd [#allocation4], 4294966272 }
 0x5f1   :  { %1845 = vsyncpa [#allocation3], 1 }
 0x5f2   :  { %1846 = vsyncpa [#allocation6], 1 }
 0x5f3   :  { %1847 = vsyncpa [#allocation9], 1 }
 0x5f4   :  { %1848 = vsyncpa [#allocation12], 1 }
 0x5f5   :  { %1849 = vsyncpa [#allocation15], 1 }
 0x5f6   :  { %1850 = vsyncpa [#allocation4], 1 }

// kernel: tpu_custom_call.1
= control target key start
LH: loop header
LB: loop body
LE: loop exit
PB: predicated region body
PF: predicated region fallthrough
CT: control target
= control target key end

     0   :  { %14 = vsyncpa [#allocation3], 0  ;;  %s2875_s0 = inlined_call_operand.hbm [shape: bf16[16,128], index: 0, kind: input, shape index: {}]   ;;  %s2876_s1 = inlined_call_operand.hbm [shape: bf16[128,256], index: 1, kind: input, shape index: {}]   ;;  %s2877_s2 = inlined_call_operand.hbm [shape: f32[5,256], index: 2, kind: input, shape index: {}]   ;;  %s2878_s3 = inlined_call_operand.hbm [shape: bf16[256,256], index: 3, kind: input, shape index: {}]   ;;  %s2879_s4 = inlined_call_operand.hbm [shape: bf16[256,256], index: 4, kind: input, shape index: {}]   ;;  %s2880_s5 = inlined_call_operand.hbm [shape: bf16[256,256], index: 5, kind: input, shape index: {}]   ;;  %s2881_s6 = inlined_call_operand.hbm [shape: bf16[256,256], index: 6, kind: input, shape index: {}]   ;;  %s2882_s7 = inlined_call_operand.hbm [shape: bf16[256,512], index: 7, kind: input, shape index: {}]   ;;  %s2883_s8 = inlined_call_operand.vmem [shape: f32[1,512], index: 8, kind: input, shape index: {}]   ;;  %s2884_s9 = inlined_call_operand.hbm [shape: f32[16,512], index: 9, kind: output, shape index: {}]  }
   0x1   :  { %15 = vsyncpa [#allocation6], 0 }
   0x2   :  { %16 = vsyncpa [#allocation9], 0 }
   0x3   :  { %17 = vsyncpa [#allocation12], 0 }
   0x4   :  { %18 = vsyncpa [#allocation15], 0 }
   0x5   :  { %19 = vsyncpa [#allocation4], 0  ;;  %s2601_s30 = smov [#allocation5]   ;;  %s2391_s13 = scalar_lea.hbm %s2876_s1, 2048 }
   0x6   :  { %s37_s10 = sshll.u32 %s2601_s30, 4  ;;  %p2392_p0 = scmp.ne.s32.totalorder %s2876_s1, %s2391_s13  ;;  %s38_s10 = int_to_ptr.vmem [resolvable:$true] %s37_s10 }
   0x7   :  { %p2395_p1 = scmp.lt.u32.totalorder %s2391_s13, %s2876_s1 }
   0x9   :  { %p2397_p2 = pnand %p2395_p1, %p2392_p0 }
   0xb   :  { %2400 = shalt.err (!%p2397_p2)
}
   0xc   :  { %s2401_s18 = scalar_lea.vmem %s38_s10, 2048  ;;  %p2406_p4 = scmp.lt.s32.totalorder %s38_s10, %s38_s10 }
   0xd   :  { %p2402_p3 = scmp.ne.s32.totalorder %s38_s10, %s2401_s18  ;;  %p2407_p5 = scmp.lt.s32.totalorder %s2401_s18, %s2401_s18 }
   0xf   :  { %p2408_p6 = por %p2407_p5, %p2406_p4 }
  0x11   :  { %p2409_p7 = pnand %p2408_p6, %p2402_p3 }
  0x13   :  { %2412 = shalt.err (!%p2409_p7)
}
  0x14   :  { %s2602_s19 = smov 128   ;;  %s2603_s20 = smov 8  }
  0x15   :  { %43 = dma.hbm_to_vmem [thread:$0]  %s2876_s1, 2048, %s38_s10, [#allocation6], %s2602_s19, %s2602_s19, %s2603_s20  }
  0x16   :  { %s2604_s23 = smov [#allocation8]   ;;  %s2605_s25 = smov [#allocation11]  }
  0x17   :  { %s59_s24 = sshll.u32 %s2604_s23, 4  ;;  %s83_s26 = sshll.u32 %s2605_s25, 4  ;;  %s60_s24 = int_to_ptr.vmem [resolvable:$true] %s59_s24  ;;  %s84_s26 = int_to_ptr.vmem [resolvable:$true] %s83_s26 }
  0x18   :  { %s2413_s29 = scalar_lea.hbm %s2878_s3, 4096 }
  0x19   :  { %p2414_p8 = scmp.ne.s32.totalorder %s2878_s3, %s2413_s29  ;;  %p2417_p9 = scmp.lt.u32.totalorder %s2413_s29, %s2878_s3 }
  0x1b   :  { %p2419_p10 = pnand %p2417_p9, %p2414_p8 }
  0x1d   :  { %2422 = shalt.err (!%p2419_p10)
}
  0x1e   :  { %s2423_s1 = scalar_lea.vmem %s60_s24, 4096  ;;  %p2428_p12 = scmp.lt.s32.totalorder %s60_s24, %s60_s24 }
  0x1f   :  { %p2424_p11 = scmp.ne.s32.totalorder %s60_s24, %s2423_s1  ;;  %p2429_p13 = scmp.lt.s32.totalorder %s2423_s1, %s2423_s1 }
  0x21   :  { %p2430_p0 = por %p2429_p13, %p2428_p12 }
  0x23   :  { %p2431_p1 = pnand %p2430_p0, %p2424_p11 }
  0x25   :  { %2434 = shalt.err (!%p2431_p1)
}
  0x26   :  { %65 = dma.hbm_to_vmem [thread:$0]  %s2878_s3, 4096, %s60_s24, [#allocation9], %s2602_s19, %s2602_s19, %s2603_s20  }
  0x27   :  { %s2435_s17 = scalar_lea.hbm %s2880_s5, 4096 }
  0x28   :  { %p2436_p2 = scmp.ne.s32.totalorder %s2880_s5, %s2435_s17  ;;  %p2439_p3 = scmp.lt.u32.totalorder %s2435_s17, %s2880_s5 }
  0x2a   :  { %p2441_p4 = pnand %p2439_p3, %p2436_p2 }
  0x2c   :  { %2444 = shalt.err (!%p2441_p4)
}
  0x2d   :  { %s2445_s25 = scalar_lea.vmem %s84_s26, 4096  ;;  %p2450_p6 = scmp.lt.s32.totalorder %s84_s26, %s84_s26 }
  0x2e   :  { %p2446_p5 = scmp.ne.s32.totalorder %s84_s26, %s2445_s25  ;;  %p2451_p7 = scmp.lt.s32.totalorder %s2445_s25, %s2445_s25 }
  0x30   :  { %p2452_p8 = por %p2451_p7, %p2450_p6 }
  0x32   :  { %p2453_p9 = pnand %p2452_p8, %p2446_p5 }
  0x34   :  { %2456 = shalt.err (!%p2453_p9)
}
  0x35   :  { %89 = dma.hbm_to_vmem [thread:$0]  %s2880_s5, 4096, %s84_s26, [#allocation12], %s2602_s19, %s2602_s19, %s2603_s20  }
  0x36   :  { %s2606_s27 = smov [#allocation2]   ;;  %s2457_s11 = scalar_lea.hbm %s2875_s0, 128 }
  0x37   :  { %s25_s28 = sshll.u32 %s2606_s27, 4  ;;  %p2458_p10 = scmp.ne.s32.totalorder %s2875_s0, %s2457_s11  ;;  %s26_s28 = int_to_ptr.vmem [resolvable:$true] %s25_s28 }
  0x38   :  { %p2461_p11 = scmp.lt.u32.totalorder %s2457_s11, %s2875_s0 }
  0x3a   :  { %p2463_p12 = pnand %p2461_p11, %p2458_p10 }
  0x3c   :  { %2466 = shalt.err (!%p2463_p12)
}
  0x3d   :  { %s2467_s14 = scalar_lea.vmem %s26_s28, 128  ;;  %p2472_p0 = scmp.lt.s32.totalorder %s26_s28, %s26_s28 }
  0x3e   :  { %p2468_p13 = scmp.ne.s32.totalorder %s26_s28, %s2467_s14  ;;  %p2473_p1 = scmp.lt.s32.totalorder %s2467_s14, %s2467_s14 }
  0x40   :  { %p2474_p2 = por %p2473_p1, %p2472_p0 }
  0x42   :  { %p2475_p3 = pnand %p2474_p2, %p2468_p13 }
  0x44   :  { %2478 = shalt.err (!%p2475_p3)
}
  0x45   :  { %s2607_s5 = smov 64   ;;  %s2608_s26 = smov 4  }
  0x46   :  { %31 = dma.hbm_to_vmem [thread:$0]  %s2875_s0, 128, %s26_s28, [#allocation3], %s2607_s5, %s2607_s5, %s2608_s26  }
  0x47   :  { %s2609_s17 = smov [#allocation7]   ;;  %s2610_s21 = smov [#allocation10]  }
  0x48   :  { %s50_s18 = sshll.u32 %s2609_s17, 4  ;;  %s71_s22 = sshll.u32 %s2610_s21, 4  ;;  %s51_s18 = int_to_ptr.vmem [resolvable:$true] %s50_s18  ;;  %s2726_s22 = int_to_ptr.vmem [resolvable:$true] %s71_s22 }
  0x49   :  { %s2479_s3 = scalar_lea.hbm %s2877_s2, 256 }
  0x4a   :  { %p2480_p4 = scmp.ne.s32.totalorder %s2877_s2, %s2479_s3  ;;  %p2483_p5 = scmp.lt.u32.totalorder %s2479_s3, %s2877_s2 }
  0x4c   :  { %p2485_p6 = pnand %p2483_p5, %p2480_p4 }
  0x4e   :  { %2488 = shalt.err (!%p2485_p6)
}
  0x4f   :  { %s2489_s0 = scalar_lea.vmem %s51_s18, 256  ;;  %p2494_p8 = scmp.lt.s32.totalorder %s51_s18, %s51_s18 }
  0x50   :  { %p2490_p7 = scmp.ne.s32.totalorder %s51_s18, %s2489_s0  ;;  %p2495_p9 = scmp.lt.s32.totalorder %s2489_s0, %s2489_s0 }
  0x52   :  { %p2496_p10 = por %p2495_p9, %p2494_p8 }
  0x54   :  { %p2497_p11 = pnand %p2496_p10, %p2490_p7 }
  0x56   :  { %2500 = shalt.err (!%p2497_p11)
}
  0x57   :  { %53 = dma.hbm_to_vmem [thread:$0]  %s2877_s2, 256, %s51_s18, [#allocation6]  }
  0x58   :  { %s2501_s1 = scalar_lea.hbm %s2879_s4, 4096 }
  0x59   :  { %p2502_p12 = scmp.ne.s32.totalorder %s2879_s4, %s2501_s1  ;;  %p2505_p13 = scmp.lt.u32.totalorder %s2501_s1, %s2879_s4 }
  0x5b   :  { %p2507_p0 = pnand %p2505_p13, %p2502_p12 }
  0x5d   :  { %2510 = shalt.err (!%p2507_p0)
}
  0x5e   :  { %s2511_s15 = scalar_lea.vmem %s2726_s22, 4096  ;;  %p2516_p2 = scmp.lt.s32.totalorder %s2726_s22, %s2726_s22 }
  0x5f   :  { %p2512_p1 = scmp.ne.s32.totalorder %s2726_s22, %s2511_s15  ;;  %p2517_p3 = scmp.lt.s32.totalorder %s2511_s15, %s2511_s15 }
  0x61   :  { %p2518_p4 = por %p2517_p3, %p2516_p2 }
  0x63   :  { %p2519_p5 = pnand %p2518_p4, %p2512_p1 }
  0x65   :  { %2522 = shalt.err (!%p2519_p5)
}
  0x66   :  { %77 = dma.hbm_to_vmem [thread:$0]  %s2879_s4, 4096, %s2726_s22, [#allocation9], %s2602_s19, %s2602_s19, %s2603_s20  }
  0x67   :  { %s2611_s17 = smov [#allocation13]   ;;  %s2612_s21 = smov [#allocation14]  }
  0x68   :  { %s95_s18 = sshll.u32 %s2611_s17, 4  ;;  %s107_s23 = sshll.u32 %s2612_s21, 4  ;;  %s96_s18 = int_to_ptr.vmem [resolvable:$true] %s95_s18  ;;  %s2760_s23 = int_to_ptr.vmem [resolvable:$true] %s107_s23 }
  0x69   :  { %s2523_s24 = scalar_lea.hbm %s2881_s6, 4096 }
  0x6a   :  { %p2524_p6 = scmp.ne.s32.totalorder %s2881_s6, %s2523_s24  ;;  %p2527_p7 = scmp.lt.u32.totalorder %s2523_s24, %s2881_s6 }
  0x6c   :  { %p2529_p8 = pnand %p2527_p7, %p2524_p6 }
  0x6e   :  { %2532 = shalt.err (!%p2529_p8)
}
  0x6f   :  { %s2533_s4 = scalar_lea.vmem %s96_s18, 4096  ;;  %p2538_p10 = scmp.lt.s32.totalorder %s96_s18, %s96_s18 }
  0x70   :  { %p2534_p9 = scmp.ne.s32.totalorder %s96_s18, %s2533_s4  ;;  %p2539_p11 = scmp.lt.s32.totalorder %s2533_s4, %s2533_s4 }
  0x72   :  { %p2540_p12 = por %p2539_p11, %p2538_p10 }
  0x74   :  { %p2541_p13 = pnand %p2540_p12, %p2534_p9 }
  0x76   :  { %2544 = shalt.err (!%p2541_p13)
}
  0x77   :  { %101 = dma.hbm_to_vmem [thread:$0]  %s2881_s6, 4096, %s96_s18, [#allocation12], %s2602_s19, %s2602_s19, %s2603_s20  }
  0x78   :  { %s2545_s13 = scalar_lea.hbm %s2882_s7, 8192 }
  0x79   :  { %p2546_p0 = scmp.ne.s32.totalorder %s2882_s7, %s2545_s13  ;;  %p2549_p1 = scmp.lt.u32.totalorder %s2545_s13, %s2882_s7 }
  0x7b   :  { %p2551_p2 = pnand %p2549_p1, %p2546_p0 }
  0x7d   :  { %2554 = shalt.err (!%p2551_p2)
}
  0x7e   :  { %s2555_s26 = scalar_lea.vmem %s2760_s23, 8192  ;;  %p2560_p4 = scmp.lt.s32.totalorder %s2760_s23, %s2760_s23 }
  0x7f   :  { %p2556_p3 = scmp.ne.s32.totalorder %s2760_s23, %s2555_s26  ;;  %p2561_p5 = scmp.lt.s32.totalorder %s2555_s26, %s2555_s26 }
  0x81   :  { %p2562_p6 = por %p2561_p5, %p2560_p4 }
  0x83   :  { %p2563_p7 = pnand %p2562_p6, %p2556_p3 }
  0x85   :  { %2566 = shalt.err (!%p2563_p7)
}
  0x86   :  { %s2613_s6 = smov 256   ;;  %s2614_s19 = smov 16  }
  0x87   :  { %113 = dma.hbm_to_vmem [thread:$0]  %s2882_s7, 8192, %s2760_s23, [#allocation15], %s2613_s6, %s2613_s6, %s2614_s19  }
  0x88   :  { %2589 = dma.done.wait [#allocation3], 128  }
  0x89   :  { %2590 = vsyncadd [#allocation3], 4294967168 }
  0x8a   :  { %2591 = dma.done.wait [#allocation6], 2304  }
  0x8b   :  { %2592 = vsyncadd [#allocation6], 4294964992 }
  0x8c   :  { %2593 = dma.done.wait [#allocation9], 8192  }
  0x8d   :  { %2594 = vsyncadd [#allocation9], 4294959104 }
  0x8e   :  { %2595 = dma.done.wait [#allocation12], 8192  }
  0x8f   :  { %2596 = vsyncadd [#allocation12], 4294959104 }
  0x90   :  { %2597 = dma.done.wait [#allocation15], 8192  }
  0x91   :  { %2598 = vsyncadd [#allocation15], 4294959104  ;;  %v2615_v0 = vmov 0   ;;  %v2078_v1 = vld [vmem:[#allocation5 + $0x4] ss:$8 sps:$4 sm:$0xff]   ;;  %v2102_v27 = vld [vmem:[#allocation2] sm:$0xff]  }
  0x92   :  { %289 = vmatprep.mubr.bf16.mxu0 %v2615_v0  ;;  %v2080_v2 = vld [vmem:[#allocation5] ss:$8 sps:$4 sm:$0xff]   ;;  %257 = vmatprep.subr.bf16.mxu0 %v2078_v1  ;;  %v2081_v3 = vld [vmem:[#allocation5 + $0x14] ss:$8 sps:$4 sm:$0xff]   ;;  %v2083_v4 = vld [vmem:[#allocation5 + $0x10] ss:$8 sps:$4 sm:$0xff]  }
  0x93   :  { %258 = vmatpush1.bf16.msra.mxu0 %v2080_v2  ;;  %v2084_v5 = vld [vmem:[#allocation5 + $0x24] ss:$8 sps:$4 sm:$0xff]   ;;  %v2086_v6 = vld [vmem:[#allocation5 + $0x20] ss:$8 sps:$4 sm:$0xff]   ;;  %v2087_v7 = vld [vmem:[#allocation5 + $0x34] ss:$8 sps:$4 sm:$0xff]  }
  0x94   :  { %259 = vmatprep.subr.bf16.mxu0 %v2081_v3  ;;  %v2089_v8 = vld [vmem:[#allocation5 + $0x30] ss:$8 sps:$4 sm:$0xff]   ;;  %v2090_v9 = vld [vmem:[#allocation5 + $0x44] ss:$8 sps:$4 sm:$0xff]   ;;  %v2103_v10 = vld [vmem:[#allocation8 + $0x4] ss:$8 sps:$4 sm:$0xff]  }
  0x95   :  { %v2105_v11 = vld [vmem:[#allocation8] ss:$8 sps:$4 sm:$0xff]   ;;  %v2106_v12 = vld [vmem:[#allocation8 + $0x14] ss:$8 sps:$4 sm:$0xff]   ;;  %511 = vmatprep.subr.bf16.mxu1 %v2103_v10  ;;  %v2092_v13 = vld [vmem:[#allocation5 + $0x40] ss:$8 sps:$4 sm:$0xff]  }
  0x96   :  { %512 = vmatpush1.bf16.msra.mxu1 %v2105_v11  ;;  %v2108_v14 = vld [vmem:[#allocation8 + $0x10] ss:$8 sps:$4 sm:$0xff]   ;;  %v2093_v15 = vld [vmem:[#allocation5 + $0x54] ss:$8 sps:$4 sm:$0xff]   ;;  %v2095_v17 = vld [vmem:[#allocation5 + $0x50] ss:$8 sps:$4 sm:$0xff]  }
  0x97   :  { %260 = vmatpush1.bf16.msra.mxu0 %v2083_v4  ;;  %513 = vmatprep.subr.bf16.mxu1 %v2106_v12  ;;  %v2109_v16 = vld [vmem:[#allocation8 + $0x24] ss:$8 sps:$4 sm:$0xff]   ;;  %v2111_v18 = vld [vmem:[#allocation8 + $0x20] ss:$8 sps:$4 sm:$0xff]   ;;  %v2096_v19 = vld [vmem:[#allocation5 + $0x64] ss:$8 sps:$4 sm:$0xff]  }
  0x98   :  { %261 = vmatprep.subr.bf16.mxu0 %v2084_v5  ;;  %v2112_v20 = vld [vmem:[#allocation8 + $0x34] ss:$8 sps:$4 sm:$0xff]   ;;  %v2098_v21 = vld [vmem:[#allocation5 + $0x60] ss:$8 sps:$4 sm:$0xff]   ;;  %v2099_v23 = vld [vmem:[#allocation5 + $0x74] ss:$8 sps:$4 sm:$0xff]  }
  0x99   :  { %v2114_v22 = vld [vmem:[#allocation8 + $0x30] ss:$8 sps:$4 sm:$0xff]   ;;  %v2115_v24 = vld [vmem:[#allocation8 + $0x44] ss:$8 sps:$4 sm:$0xff]   ;;  %v2101_v25 = vld [vmem:[#allocation5 + $0x70] ss:$8 sps:$4 sm:$0xff]  }
  0x9a   :  { %514 = vmatpush1.bf16.msra.mxu1 %v2108_v14  ;;  %v2117_v26 = vld [vmem:[#allocation8 + $0x40] ss:$8 sps:$4 sm:$0xff]   ;;  %v2118_v28 = vld [vmem:[#allocation8 + $0x54] ss:$8 sps:$4 sm:$0xff]   ;;  %v2120_v29 = vld [vmem:[#allocation8 + $0x50] ss:$8 sps:$4 sm:$0xff]   ;;  %v161_v14 = vlaneseq }
  0x9b   :  { %262 = vmatpush1.bf16.msra.mxu0 %v2086_v6  ;;  %515 = vmatprep.subr.bf16.mxu1 %v2109_v16  ;;  %v2121_v30 = vld [vmem:[#allocation8 + $0x64] ss:$8 sps:$4 sm:$0xff]   ;;  %v2123_v31 = vld [vmem:[#allocation8 + $0x60] ss:$8 sps:$4 sm:$0xff]   ;;  %v2124_v32 = vld [vmem:[#allocation8 + $0x74] ss:$8 sps:$4 sm:$0xff]  }
  0x9c   :  { %263 = vmatprep.subr.bf16.mxu0 %v2087_v7  ;;  %v2126_v33 = vld [vmem:[#allocation8 + $0x70] ss:$8 sps:$4 sm:$0xff]   ;;  %v2127_v34 = vld [vmem:[#allocation8 + $0x84] ss:$8 sps:$4 sm:$0xff]   ;;  %v2129_v35 = vld [vmem:[#allocation8 + $0x80] ss:$8 sps:$4 sm:$0xff]  }
  0x9d   :  { %v2130_v36 = vld [vmem:[#allocation8 + $0x94] ss:$8 sps:$4 sm:$0xff]   ;;  %v2132_v37 = vld [vmem:[#allocation8 + $0x90] ss:$8 sps:$4 sm:$0xff]   ;;  %v2133_v38 = vld [vmem:[#allocation8 + $0xa4] ss:$8 sps:$4 sm:$0xff]  }
  0x9e   :  { %516 = vmatpush1.bf16.msra.mxu1 %v2111_v18  ;;  %v2135_v39 = vld [vmem:[#allocation8 + $0xa0] ss:$8 sps:$4 sm:$0xff]   ;;  %v2136_v40 = vld [vmem:[#allocation8 + $0xb4] ss:$8 sps:$4 sm:$0xff]   ;;  %v2138_v41 = vld [vmem:[#allocation8 + $0xb0] ss:$8 sps:$4 sm:$0xff]  }
  0x9f   :  { %264 = vmatpush1.bf16.msra.mxu0 %v2089_v8  ;;  %517 = vmatprep.subr.bf16.mxu1 %v2112_v20  ;;  %v2139_v42 = vld [vmem:[#allocation8 + $0xc4] ss:$8 sps:$4 sm:$0xff]   ;;  %v2141_v43 = vld [vmem:[#allocation8 + $0xc0] ss:$8 sps:$4 sm:$0xff]   ;;  %v2142_v44 = vld [vmem:[#allocation8 + $0xd4] ss:$8 sps:$4 sm:$0xff]  }
  0xa0   :  { %265 = vmatprep.subr.bf16.mxu0 %v2090_v9  ;;  %v2144_v45 = vld [vmem:[#allocation8 + $0xd0] ss:$8 sps:$4 sm:$0xff]   ;;  %v2145_v46 = vld [vmem:[#allocation8 + $0xe4] ss:$8 sps:$4 sm:$0xff]   ;;  %v2147_v47 = vld [vmem:[#allocation8 + $0xe0] ss:$8 sps:$4 sm:$0xff]  }
  0xa1   :  { %v2148_v48 = vld [vmem:[#allocation8 + $0xf4] ss:$8 sps:$4 sm:$0xff]   ;;  %v2150_v49 = vld [vmem:[#allocation8 + $0xf0] ss:$8 sps:$4 sm:$0xff]   ;;  %v2151_v50 = vld [vmem:[#allocation10] ss:$8 sps:$4 sm:$0xff]  }
  0xa2   :  { %518 = vmatpush1.bf16.msra.mxu1 %v2114_v22  ;;  %v2153_v51 = vld [vmem:[#allocation10 + $0x4] ss:$8 sps:$4 sm:$0xff]   ;;  %v2156_v52 = vld [vmem:[#allocation10 + $0x14] ss:$8 sps:$4 sm:$0xff]   ;;  %v2154_v53 = vld [vmem:[#allocation10 + $0x10] ss:$8 sps:$4 sm:$0xff]  }
  0xa3   :  { %266 = vmatpush1.bf16.msra.mxu0 %v2092_v13  ;;  %519 = vmatprep.subr.bf16.mxu1 %v2115_v24  ;;  %v2159_v54 = vld [vmem:[#allocation10 + $0x24] ss:$8 sps:$4 sm:$0xff]   ;;  %v2157_v55 = vld [vmem:[#allocation10 + $0x20] ss:$8 sps:$4 sm:$0xff]   ;;  %v2162_v56 = vld [vmem:[#allocation10 + $0x34] ss:$8 sps:$4 sm:$0xff]  }
  0xa4   :  { %267 = vmatprep.subr.bf16.mxu0 %v2093_v15  ;;  %v2160_v57 = vld [vmem:[#allocation10 + $0x30] ss:$8 sps:$4 sm:$0xff]   ;;  %v2165_v58 = vld [vmem:[#allocation10 + $0x44] ss:$8 sps:$4 sm:$0xff]   ;;  %v2163_v59 = vld [vmem:[#allocation10 + $0x40] ss:$8 sps:$4 sm:$0xff]  }
  0xa5   :  { %v2168_v60 = vld [vmem:[#allocation10 + $0x54] ss:$8 sps:$4 sm:$0xff]   ;;  %v2166_v61 = vld [vmem:[#allocation10 + $0x50] ss:$8 sps:$4 sm:$0xff]   ;;  %v2171_v62 = vld [vmem:[#allocation10 + $0x64] ss:$8 sps:$4 sm:$0xff]  }
  0xa6   :  { %520 = vmatpush1.bf16.msra.mxu1 %v2117_v26  ;;  %v2169_v63 = vld [vmem:[#allocation10 + $0x60] ss:$8 sps:$4 sm:$0xff]   ;;  %v2174_v0 = vld [vmem:[#allocation10 + $0x74] ss:$8 sps:$4 sm:$0xff]   ;;  %v2172_v1 = vld [vmem:[#allocation10 + $0x70] ss:$8 sps:$4 sm:$0xff]  }
  0xa7   :  { %268 = vmatpush1.bf16.msra.mxu0 %v2095_v17  ;;  %521 = vmatprep.subr.bf16.mxu1 %v2118_v28  ;;  %v2177_v2 = vld [vmem:[#allocation10 + $0x84] ss:$8 sps:$4 sm:$0xff]   ;;  %v2175_v3 = vld [vmem:[#allocation10 + $0x80] ss:$8 sps:$4 sm:$0xff]   ;;  %v2180_v4 = vld [vmem:[#allocation10 + $0x94] ss:$8 sps:$4 sm:$0xff]  }
  0xa8   :  { %269 = vmatprep.subr.bf16.mxu0 %v2096_v19  ;;  %v2178_v5 = vld [vmem:[#allocation10 + $0x90] ss:$8 sps:$4 sm:$0xff]   ;;  %v2183_v6 = vld [vmem:[#allocation10 + $0xa4] ss:$8 sps:$4 sm:$0xff]   ;;  %v2181_v7 = vld [vmem:[#allocation10 + $0xa0] ss:$8 sps:$4 sm:$0xff]  }
  0xa9   :  { %v2186_v8 = vld [vmem:[#allocation10 + $0xb4] ss:$8 sps:$4 sm:$0xff]   ;;  %v2184_v9 = vld [vmem:[#allocation10 + $0xb0] ss:$8 sps:$4 sm:$0xff]   ;;  %v2189_v10 = vld [vmem:[#allocation10 + $0xc4] ss:$8 sps:$4 sm:$0xff]  }
  0xaa   :  { %522 = vmatpush1.bf16.msra.mxu1 %v2120_v29  ;;  %v2187_v11 = vld [vmem:[#allocation10 + $0xc0] ss:$8 sps:$4 sm:$0xff]   ;;  %v2192_v12 = vld [vmem:[#allocation10 + $0xd4] ss:$8 sps:$4 sm:$0xff]   ;;  %v2190_v13 = vld [vmem:[#allocation10 + $0xd0] ss:$8 sps:$4 sm:$0xff]  }
  0xab   :  { %270 = vmatpush1.bf16.msra.mxu0 %v2098_v21  ;;  %523 = vmatprep.subr.bf16.mxu1 %v2121_v30  ;;  %v2794_v15 = vshrl.u32 %v161_v14, 7  ;;  %v159_v17 = vld [vmem:[#allocation7] ss:$8 sm:$0x3]  ;;  %s2616_s16 = smov [#allocation16]  }
  0xac   :  { %271 = vmatprep.subr.bf16.mxu0 %v2099_v23  ;;  %s1835_s17 = sshll.u32 %s2616_s16, 4  ;;  %s1836_s17 = int_to_ptr.vmem [resolvable:$true] %s1835_s17 }
  0xad   :  { %v2797_v16 = vsub.s32 1, %v2794_v15  ;;  %v2800_v18 = vsub.s32 0, %v2794_v15  ;;  %p2572_p9 = scmp.lt.s32.totalorder %s1836_s17, %s1836_s17 }
  0xae   :  { %524 = vmatpush1.bf16.msra.mxu1 %v2123_v31 }
  0xaf   :  { %272 = vmatpush1.bf16.msra.mxu0 %v2101_v25  ;;  %525 = vmatprep.subr.bf16.mxu1 %v2124_v32  ;;  %v168_v19 = vrot.slane %v159_v17, %v2797_v16  ;;  %v164_v20 = vrot.slane %v159_v17, %v2800_v18 }
  0xb0   :  { %765 = vmatprep.subr.bf16.mxu0 %v2153_v51  ;;  %v2219_v51 = vld [vmem:[#allocation11 + $0x64] ss:$8 sps:$4 sm:$0xff]  }
  0xb2   :  { %290 = vmatmul.mubr.bf16.vlgmr.msra.gmra.mrb[0].mxu0 %v2102_v27  ;;  %526 = vmatpush1.bf16.msra.mxu1 %v2126_v33 }
  0xb3   :  { %527 = vmatprep.subr.bf16.mxu1 %v2127_v34  ;;  %766 = vmatpush1.bf16.msra.mxu0 %v2151_v50  ;;  %v2214_v50 = vld [vmem:[#allocation11 + $0x50] ss:$8 sps:$4 sm:$0xff]  }
  0xb4   :  { %767 = vmatprep.subr.bf16.mxu0 %v2156_v52  ;;  %v2217_v52 = vld [vmem:[#allocation11 + $0x60] ss:$8 sps:$4 sm:$0xff]  }
  0xb6   :  { %528 = vmatpush1.bf16.msra.mxu1 %v2129_v35  ;;  %v2195_v35 = vld [vmem:[#allocation10 + $0xe4] ss:$8 sps:$4 sm:$0xff]  }
  0xb7   :  { %529 = vmatprep.subr.bf16.mxu1 %v2130_v36  ;;  %768 = vmatpush1.bf16.msra.mxu0 %v2154_v53  ;;  %v2193_v36 = vld [vmem:[#allocation10 + $0xe0] ss:$8 sps:$4 sm:$0xff]   ;;  %v2222_v53 = vld [vmem:[#allocation11 + $0x74] ss:$8 sps:$4 sm:$0xff]  }
  0xb8   :  { %769 = vmatprep.subr.bf16.mxu0 %v2159_v54  ;;  %v2220_v54 = vld [vmem:[#allocation11 + $0x70] ss:$8 sps:$4 sm:$0xff]  }
  0xba   :  { %530 = vmatpush1.bf16.msra.mxu1 %v2132_v37  ;;  %v2198_v37 = vld [vmem:[#allocation10 + $0xf4] ss:$8 sps:$4 sm:$0xff]  }
  0xbb   :  { %531 = vmatprep.subr.bf16.mxu1 %v2133_v38  ;;  %770 = vmatpush1.bf16.msra.mxu0 %v2157_v55  ;;  %v2196_v38 = vld [vmem:[#allocation10 + $0xf0] ss:$8 sps:$4 sm:$0xff]   ;;  %v2225_v55 = vld [vmem:[#allocation11 + $0x84] ss:$8 sps:$4 sm:$0xff]  }
  0xbc   :  { %771 = vmatprep.subr.bf16.mxu0 %v2162_v56  ;;  %v2223_v56 = vld [vmem:[#allocation11 + $0x80] ss:$8 sps:$4 sm:$0xff]  }
  0xbe   :  { %532 = vmatpush1.bf16.msra.mxu1 %v2135_v39  ;;  %v2199_v39 = vld [vmem:[#allocation11] ss:$8 sps:$4 sm:$0xff]  }
  0xbf   :  { %533 = vmatprep.subr.bf16.mxu1 %v2136_v40  ;;  %772 = vmatpush1.bf16.msra.mxu0 %v2160_v57  ;;  %v2201_v40 = vld [vmem:[#allocation11 + $0x4] ss:$8 sps:$4 sm:$0xff]   ;;  %v2228_v57 = vld [vmem:[#allocation11 + $0x94] ss:$8 sps:$4 sm:$0xff]  }
  0xc0   :  { %773 = vmatprep.subr.bf16.mxu0 %v2165_v58  ;;  %v2226_v58 = vld [vmem:[#allocation11 + $0x90] ss:$8 sps:$4 sm:$0xff]  }
  0xc2   :  { %534 = vmatpush1.bf16.msra.mxu1 %v2138_v41  ;;  %v2204_v41 = vld [vmem:[#allocation11 + $0x14] ss:$8 sps:$4 sm:$0xff]  }
  0xc3   :  { %535 = vmatprep.subr.bf16.mxu1 %v2139_v42  ;;  %774 = vmatpush1.bf16.msra.mxu0 %v2163_v59  ;;  %v2202_v42 = vld [vmem:[#allocation11 + $0x10] ss:$8 sps:$4 sm:$0xff]   ;;  %v2231_v59 = vld [vmem:[#allocation11 + $0xa4] ss:$8 sps:$4 sm:$0xff]  }
  0xc4   :  { %775 = vmatprep.subr.bf16.mxu0 %v2168_v60  ;;  %v2229_v60 = vld [vmem:[#allocation11 + $0xa0] ss:$8 sps:$4 sm:$0xff]  }
  0xc6   :  { %536 = vmatpush1.bf16.msra.mxu1 %v2141_v43  ;;  %v2207_v43 = vld [vmem:[#allocation11 + $0x24] ss:$8 sps:$4 sm:$0xff]  }
  0xc7   :  { %537 = vmatprep.subr.bf16.mxu1 %v2142_v44  ;;  %776 = vmatpush1.bf16.msra.mxu0 %v2166_v61  ;;  %v2205_v44 = vld [vmem:[#allocation11 + $0x20] ss:$8 sps:$4 sm:$0xff]   ;;  %v2234_v61 = vld [vmem:[#allocation11 + $0xb4] ss:$8 sps:$4 sm:$0xff]  }
  0xc8   :  { %777 = vmatprep.subr.bf16.mxu0 %v2171_v62  ;;  %v2232_v62 = vld [vmem:[#allocation11 + $0xb0] ss:$8 sps:$4 sm:$0xff]  }
  0xca   :  { %538 = vmatpush1.bf16.msra.mxu1 %v2144_v45  ;;  %v2210_v45 = vld [vmem:[#allocation11 + $0x34] ss:$8 sps:$4 sm:$0xff]  }
  0xcb   :  { %539 = vmatprep.subr.bf16.mxu1 %v2145_v46  ;;  %778 = vmatpush1.bf16.msra.mxu0 %v2169_v63  ;;  %v2208_v46 = vld [vmem:[#allocation11 + $0x30] ss:$8 sps:$4 sm:$0xff]   ;;  %v2237_v63 = vld [vmem:[#allocation11 + $0xc4] ss:$8 sps:$4 sm:$0xff]  }
  0xcc   :  { %779 = vmatprep.subr.bf16.mxu0 %v2174_v0  ;;  %v2235_v0 = vld [vmem:[#allocation11 + $0xc0] ss:$8 sps:$4 sm:$0xff]  }
  0xce   :  { %540 = vmatpush1.bf16.msra.mxu1 %v2147_v47  ;;  %v2213_v47 = vld [vmem:[#allocation11 + $0x44] ss:$8 sps:$4 sm:$0xff]  }
  0xcf   :  { %541 = vmatprep.subr.bf16.mxu1 %v2148_v48  ;;  %780 = vmatpush1.bf16.msra.mxu0 %v2172_v1  ;;  %v2211_v48 = vld [vmem:[#allocation11 + $0x40] ss:$8 sps:$4 sm:$0xff]   ;;  %v339_v1 = vld [vmem:[#allocation7 + $0x1] ss:$8 sm:$0x3] }
  0xd0   :  { %781 = vmatprep.subr.bf16.mxu0 %v2177_v2  ;;  %v344_v2 = vrot.slane %v339_v1, %v2800_v18 }
  0xd2   :  { %542 = vmatpush1.bf16.msra.mxu1 %v2150_v49  ;;  %v2216_v49 = vld [vmem:[#allocation11 + $0x54] ss:$8 sps:$4 sm:$0xff]  }
  0xd3   :  { %782 = vmatpush1.bf16.msra.mxu0 %v2175_v3  ;;  %1023 = vmatprep.subr.bf16.mxu1 %v2201_v40  ;;  %v348_v3 = vrot.slane %v339_v1, %v2797_v16  ;;  %v2253_v40 = vld [vmem:[#allocation13 + $0x20] ss:$8 sps:$4 sm:$0xff]  }
  0xd4   :  { %783 = vmatprep.subr.bf16.mxu0 %v2180_v4 }
  0xd7   :  { %784 = vmatpush1.bf16.msra.mxu0 %v2178_v5 }
  0xd8   :  { %785 = vmatprep.subr.bf16.mxu0 %v2183_v6 }
  0xdb   :  { %786 = vmatpush1.bf16.msra.mxu0 %v2181_v7 }
  0xdc   :  { %787 = vmatprep.subr.bf16.mxu0 %v2186_v8 }
  0xdf   :  { %788 = vmatpush1.bf16.msra.mxu0 %v2184_v9 }
  0xe0   :  { %789 = vmatprep.subr.bf16.mxu0 %v2189_v10 }
  0xe3   :  { %790 = vmatpush1.bf16.msra.mxu0 %v2187_v11 }
  0xe4   :  { %791 = vmatprep.subr.bf16.mxu0 %v2192_v12 }
  0xe7   :  { %792 = vmatpush1.bf16.msra.mxu0 %v2190_v13 }
  0xe8   :  { %793 = vmatprep.subr.bf16.mxu0 %v2195_v35  ;;  %v2247_v35 = vld [vmem:[#allocation13] ss:$8 sps:$4 sm:$0xff]  }
  0xeb   :  { %794 = vmatpush1.bf16.msra.mxu0 %v2193_v36  ;;  %v2249_v36 = vld [vmem:[#allocation13 + $0x4] ss:$8 sps:$4 sm:$0xff]  }
  0xec   :  { %795 = vmatprep.subr.bf16.mxu0 %v2198_v37  ;;  %v2252_v37 = vld [vmem:[#allocation13 + $0x14] ss:$8 sps:$4 sm:$0xff]  }
  0xef   :  { %796 = vmatpush1.bf16.msra.mxu0 %v2196_v38  ;;  %v2250_v38 = vld [vmem:[#allocation13 + $0x10] ss:$8 sps:$4 sm:$0xff]  }
  0xf0   :  { %1277 = vmatprep.subr.bf16.mxu0 %v2249_v36  ;;  %v2321_v36 = vld [vmem:[#allocation14 + $0x84] ss:$16 sps:$4 sm:$0xff]  }
 0x185   :  { %v291_v21 = vpop.f32.mrb[0].mxu0 }
 0x186   :  { %v293_v22 = vpop.f32.mrb[1].mxu0  ;;  %v2806_v25 = vadd.f32 %v291_v21, %v164_v20  ;;  %v2240_v21 = vld [vmem:[#allocation11 + $0xd4] ss:$8 sps:$4 sm:$0xff]  }
 0x187   :  { %v2804_v23 = vadd.f32 %v293_v22, %v168_v19  ;;  %v295_v24 = vpop.f32.mrb[2].mxu0  ;;  %v2238_v22 = vld [vmem:[#allocation11 + $0xd0] ss:$8 sps:$4 sm:$0xff]  }
 0x188   :  { %v2808_v26 = vadd.f32 %v295_v24, %v164_v20  ;;  %v297_v27 = vpop.f32.mrb[3].mxu0  ;;  %v300_v32 = vmax.f32 %v2806_v25, 0.0  ;;  %v2243_v24 = vld [vmem:[#allocation11 + $0xe4] ss:$8 sps:$4 sm:$0xff]  }
 0x189   :  { %v2810_v28 = vadd.f32 %v297_v27, %v168_v19  ;;  %v301_v30 = vmax.f32 %v2804_v23, 0.0  ;;  %v2241_v27 = vld [vmem:[#allocation11 + $0xe0] ss:$8 sps:$4 sm:$0xff]   ;;  %v2297_v25 = vld [vmem:[#allocation14 + $0x4] ss:$16 sps:$4 sm:$0xff]  }
 0x18a   :  { %v302_v29 = vmax.f32 %v2808_v26, 0.0  ;;  %v2289_v23 = vld [vmem:[#allocation13 + $0xe0] ss:$8 sps:$4 sm:$0xff]  }
 0x18b   :  { %v303_v31 = vmax.f32 %v2810_v28, 0.0  ;;  %v2292_v28 = vld [vmem:[#allocation13 + $0xf0] ss:$8 sps:$4 sm:$0xff]  }
 0x18c   :  { %v304_v34 = vpack.c.bf16 %v302_v29, %v300_v32 }
 0x18d   :  { %v305_v33 = vpack.c.bf16 %v303_v31, %v301_v30 }
 0x18f   :  { %543 = vmatprep.mubr.bf16.mxu1 %v305_v33  ;;  %v2246_v33 = vld [vmem:[#allocation11 + $0xf4] ss:$8 sps:$4 sm:$0xff]  }
 0x190   :  { %544 = vmatmul.mubr.bf16.vlgmr.msra.gmra.mrb[0].mxu1 %v304_v34  ;;  %v2244_v34 = vld [vmem:[#allocation11 + $0xf0] ss:$8 sps:$4 sm:$0xff]  }
 0x191   :  { %1024 = vmatpush1.bf16.msra.mxu1 %v2199_v39  ;;  %v2255_v39 = vld [vmem:[#allocation13 + $0x24] ss:$8 sps:$4 sm:$0xff]  }
 0x192   :  { %1025 = vmatprep.subr.bf16.mxu1 %v2204_v41  ;;  %v2258_v41 = vld [vmem:[#allocation13 + $0x34] ss:$8 sps:$4 sm:$0xff]  }
 0x195   :  { %1026 = vmatpush1.bf16.msra.mxu1 %v2202_v42  ;;  %v2256_v42 = vld [vmem:[#allocation13 + $0x30] ss:$8 sps:$4 sm:$0xff]  }
 0x196   :  { %1027 = vmatprep.subr.bf16.mxu1 %v2207_v43  ;;  %v2261_v43 = vld [vmem:[#allocation13 + $0x44] ss:$8 sps:$4 sm:$0xff]  }
 0x199   :  { %1028 = vmatpush1.bf16.msra.mxu1 %v2205_v44  ;;  %v2259_v44 = vld [vmem:[#allocation13 + $0x40] ss:$8 sps:$4 sm:$0xff]  }
 0x19a   :  { %1029 = vmatprep.subr.bf16.mxu1 %v2210_v45  ;;  %v2264_v45 = vld [vmem:[#allocation13 + $0x54] ss:$8 sps:$4 sm:$0xff]  }
 0x19d   :  { %1030 = vmatpush1.bf16.msra.mxu1 %v2208_v46  ;;  %v2262_v46 = vld [vmem:[#allocation13 + $0x50] ss:$8 sps:$4 sm:$0xff]  }
 0x19e   :  { %1031 = vmatprep.subr.bf16.mxu1 %v2213_v47  ;;  %v2267_v47 = vld [vmem:[#allocation13 + $0x64] ss:$8 sps:$4 sm:$0xff]  }
 0x1a1   :  { %1032 = vmatpush1.bf16.msra.mxu1 %v2211_v48  ;;  %v2265_v48 = vld [vmem:[#allocation13 + $0x60] ss:$8 sps:$4 sm:$0xff]  }
 0x1a2   :  { %1033 = vmatprep.subr.bf16.mxu1 %v2216_v49  ;;  %v2270_v49 = vld [vmem:[#allocation13 + $0x74] ss:$8 sps:$4 sm:$0xff]  }
 0x1a5   :  { %1034 = vmatpush1.bf16.msra.mxu1 %v2214_v50  ;;  %v2268_v50 = vld [vmem:[#allocation13 + $0x70] ss:$8 sps:$4 sm:$0xff]  }
 0x1a6   :  { %1035 = vmatprep.subr.bf16.mxu1 %v2219_v51  ;;  %v2273_v51 = vld [vmem:[#allocation13 + $0x84] ss:$8 sps:$4 sm:$0xff]  }
 0x1a9   :  { %1036 = vmatpush1.bf16.msra.mxu1 %v2217_v52  ;;  %v2271_v52 = vld [vmem:[#allocation13 + $0x80] ss:$8 sps:$4 sm:$0xff]  }
 0x1aa   :  { %1037 = vmatprep.subr.bf16.mxu1 %v2222_v53  ;;  %v2276_v53 = vld [vmem:[#allocation13 + $0x94] ss:$8 sps:$4 sm:$0xff]  }
 0x1ad   :  { %1038 = vmatpush1.bf16.msra.mxu1 %v2220_v54  ;;  %v2274_v54 = vld [vmem:[#allocation13 + $0x90] ss:$8 sps:$4 sm:$0xff]  }
 0x1ae   :  { %1039 = vmatprep.subr.bf16.mxu1 %v2225_v55  ;;  %v2279_v55 = vld [vmem:[#allocation13 + $0xa4] ss:$8 sps:$4 sm:$0xff]  }
 0x1b1   :  { %1040 = vmatpush1.bf16.msra.mxu1 %v2223_v56  ;;  %v2277_v56 = vld [vmem:[#allocation13 + $0xa0] ss:$8 sps:$4 sm:$0xff]  }
 0x1b2   :  { %1041 = vmatprep.subr.bf16.mxu1 %v2228_v57  ;;  %v2282_v57 = vld [vmem:[#allocation13 + $0xb4] ss:$8 sps:$4 sm:$0xff]  }
 0x1b5   :  { %1042 = vmatpush1.bf16.msra.mxu1 %v2226_v58  ;;  %v2280_v58 = vld [vmem:[#allocation13 + $0xb0] ss:$8 sps:$4 sm:$0xff]  }
 0x1b6   :  { %1043 = vmatprep.subr.bf16.mxu1 %v2231_v59  ;;  %v2285_v59 = vld [vmem:[#allocation13 + $0xc4] ss:$8 sps:$4 sm:$0xff]  }
 0x1b9   :  { %1044 = vmatpush1.bf16.msra.mxu1 %v2229_v60  ;;  %v2283_v60 = vld [vmem:[#allocation13 + $0xc0] ss:$8 sps:$4 sm:$0xff]  }
 0x1ba   :  { %1045 = vmatprep.subr.bf16.mxu1 %v2234_v61  ;;  %v2288_v61 = vld [vmem:[#allocation13 + $0xd4] ss:$8 sps:$4 sm:$0xff]  }
 0x1bd   :  { %1046 = vmatpush1.bf16.msra.mxu1 %v2232_v62  ;;  %v2286_v62 = vld [vmem:[#allocation13 + $0xd0] ss:$8 sps:$4 sm:$0xff]  }
 0x1be   :  { %1047 = vmatprep.subr.bf16.mxu1 %v2237_v63  ;;  %v593_v63 = vld [vmem:[#allocation7 + $0x2] ss:$8 sm:$0x3] }
 0x1bf   :  { %v602_v1 = vrot.slane %v593_v63, %v2797_v16 }
 0x1c1   :  { %1048 = vmatpush1.bf16.msra.mxu1 %v2235_v0  ;;  %v598_v0 = vrot.slane %v593_v63, %v2800_v18 }
 0x1c2   :  { %1049 = vmatprep.subr.bf16.mxu1 %v2240_v21 }
 0x1c5   :  { %1050 = vmatpush1.bf16.msra.mxu1 %v2238_v22  ;;  %v2303_v22 = vld [vmem:[#allocation14 + $0x24] ss:$16 sps:$4 sm:$0xff]  }
 0x1c6   :  { %1051 = vmatprep.subr.bf16.mxu1 %v2243_v24  ;;  %v2301_v24 = vld [vmem:[#allocation14 + $0x20] ss:$16 sps:$4 sm:$0xff]  }
 0x1c9   :  { %1052 = vmatpush1.bf16.msra.mxu1 %v2241_v27  ;;  %v2309_v27 = vld [vmem:[#allocation14 + $0x44] ss:$16 sps:$4 sm:$0xff]  }
 0x1ca   :  { %1053 = vmatprep.subr.bf16.mxu1 %v2246_v33  ;;  %v2307_v33 = vld [vmem:[#allocation14 + $0x40] ss:$16 sps:$4 sm:$0xff]  }
 0x1cd   :  { %1054 = vmatpush1.bf16.msra.mxu1 %v2244_v34  ;;  %v2315_v34 = vld [vmem:[#allocation14 + $0x64] ss:$16 sps:$4 sm:$0xff]  }
 0x1ce   :  { %1736 = vmatprep.subr.bf16.mxu1 %v2297_v25  ;;  %v2340_v25 = vld [vmem:[#allocation14 + $0xe8] ss:$16 sps:$4 sm:$0xff]  }
 0x263   :  { %v545_v4 = vpop.f32.mrb[0].mxu1 }
 0x264   :  { %v546_v5 = vadd.f32 %v545_v4, %v344_v2  ;;  %v547_v6 = vpop.f32.mrb[1].mxu1 }
 0x265   :  { %v548_v7 = vadd.f32 %v547_v6, %v348_v3  ;;  %v549_v8 = vpop.f32.mrb[2].mxu1 }
 0x266   :  { %v550_v9 = vadd.f32 %v549_v8, %v344_v2  ;;  %v551_v10 = vpop.f32.mrb[3].mxu1  ;;  %v554_v12 = vmax.f32 %v546_v5, 0.0 }
 0x267   :  { %v552_v11 = vadd.f32 %v551_v10, %v348_v3  ;;  %v555_v14 = vmax.f32 %v548_v7, 0.0 }
 0x268   :  { %v556_v13 = vmax.f32 %v550_v9, 0.0 }
 0x269   :  { %v557_v17 = vmax.f32 %v552_v11, 0.0 }
 0x26a   :  { %v558_v19 = vpack.c.bf16 %v556_v13, %v554_v12 }
 0x26b   :  { %v559_v20 = vpack.c.bf16 %v557_v17, %v555_v14 }
 0x26d   :  { %797 = vmatprep.mubr.bf16.mxu0 %v559_v20 }
 0x26e   :  { %798 = vmatmul.mubr.bf16.vlgmr.msra.gmra.mrb[4].mxu0 %v558_v19 }
 0x26f   :  { %1278 = vmatpush1.bf16.msra.mxu0 %v2247_v35  ;;  %v2313_v35 = vld [vmem:[#allocation14 + $0x60] ss:$16 sps:$4 sm:$0xff]  }
 0x270   :  { %1279 = vmatprep.subr.bf16.mxu0 %v2252_v37  ;;  %v2319_v37 = vld [vmem:[#allocation14 + $0x80] ss:$16 sps:$4 sm:$0xff]  }
 0x273   :  { %1280 = vmatpush1.bf16.msra.mxu0 %v2250_v38  ;;  %v2327_v38 = vld [vmem:[#allocation14 + $0xa4] ss:$16 sps:$4 sm:$0xff]  }
 0x274   :  { %1281 = vmatprep.subr.bf16.mxu0 %v2255_v39  ;;  %v2325_v39 = vld [vmem:[#allocation14 + $0xa0] ss:$16 sps:$4 sm:$0xff]  }
 0x277   :  { %1282 = vmatpush1.bf16.msra.mxu0 %v2253_v40  ;;  %v2333_v40 = vld [vmem:[#allocation14 + $0xc4] ss:$16 sps:$4 sm:$0xff]  }
 0x278   :  { %1283 = vmatprep.subr.bf16.mxu0 %v2258_v41  ;;  %v2331_v41 = vld [vmem:[#allocation14 + $0xc0] ss:$16 sps:$4 sm:$0xff]  }
 0x27b   :  { %1284 = vmatpush1.bf16.msra.mxu0 %v2256_v42  ;;  %v2339_v42 = vld [vmem:[#allocation14 + $0xe4] ss:$16 sps:$4 sm:$0xff]  }
 0x27c   :  { %1285 = vmatprep.subr.bf16.mxu0 %v2261_v43  ;;  %v2337_v43 = vld [vmem:[#allocation14 + $0xe0] ss:$16 sps:$4 sm:$0xff]  }
 0x27f   :  { %1286 = vmatpush1.bf16.msra.mxu0 %v2259_v44  ;;  %v2345_v44 = vld [vmem:[#allocation14 + $0x104] ss:$16 sps:$4 sm:$0xff]  }
 0x280   :  { %1287 = vmatprep.subr.bf16.mxu0 %v2264_v45  ;;  %v2343_v45 = vld [vmem:[#allocation14 + $0x100] ss:$16 sps:$4 sm:$0xff]  }
 0x283   :  { %1288 = vmatpush1.bf16.msra.mxu0 %v2262_v46  ;;  %v2351_v46 = vld [vmem:[#allocation14 + $0x124] ss:$16 sps:$4 sm:$0xff]  }
 0x284   :  { %1289 = vmatprep.subr.bf16.mxu0 %v2267_v47  ;;  %v2349_v47 = vld [vmem:[#allocation14 + $0x120] ss:$16 sps:$4 sm:$0xff]  }
 0x287   :  { %1290 = vmatpush1.bf16.msra.mxu0 %v2265_v48  ;;  %v2357_v48 = vld [vmem:[#allocation14 + $0x144] ss:$16 sps:$4 sm:$0xff]  }
 0x288   :  { %1291 = vmatprep.subr.bf16.mxu0 %v2270_v49  ;;  %v2355_v49 = vld [vmem:[#allocation14 + $0x140] ss:$16 sps:$4 sm:$0xff]  }
 0x28b   :  { %1292 = vmatpush1.bf16.msra.mxu0 %v2268_v50  ;;  %v2363_v50 = vld [vmem:[#allocation14 + $0x164] ss:$16 sps:$4 sm:$0xff]  }
 0x28c   :  { %1293 = vmatprep.subr.bf16.mxu0 %v2273_v51  ;;  %v2361_v51 = vld [vmem:[#allocation14 + $0x160] ss:$16 sps:$4 sm:$0xff]  }
 0x28f   :  { %1294 = vmatpush1.bf16.msra.mxu0 %v2271_v52  ;;  %v2369_v52 = vld [vmem:[#allocation14 + $0x184] ss:$16 sps:$4 sm:$0xff]  }
 0x290   :  { %1295 = vmatprep.subr.bf16.mxu0 %v2276_v53  ;;  %v2367_v53 = vld [vmem:[#allocation14 + $0x180] ss:$16 sps:$4 sm:$0xff]  }
 0x293   :  { %1296 = vmatpush1.bf16.msra.mxu0 %v2274_v54  ;;  %v851_v54 = vld [vmem:[#allocation7 + $0x3] ss:$8 sm:$0x3] }
 0x294   :  { %1297 = vmatprep.subr.bf16.mxu0 %v2279_v55  ;;  %v856_v55 = vrot.slane %v851_v54, %v2800_v18 }
 0x297   :  { %1298 = vmatpush1.bf16.msra.mxu0 %v2277_v56  ;;  %v860_v56 = vrot.slane %v851_v54, %v2797_v16 }
 0x298   :  { %1299 = vmatprep.subr.bf16.mxu0 %v2282_v57 }
 0x29b   :  { %1300 = vmatpush1.bf16.msra.mxu0 %v2280_v58 }
 0x29c   :  { %1301 = vmatprep.subr.bf16.mxu0 %v2285_v59 }
 0x29f   :  { %1302 = vmatpush1.bf16.msra.mxu0 %v2283_v60 }
 0x2a0   :  { %1303 = vmatprep.subr.bf16.mxu0 %v2288_v61 }
 0x2a3   :  { %1304 = vmatpush1.bf16.msra.mxu0 %v2286_v62 }
 0x341   :  { %v799_v2 = vpop.f32.mrb[4].mxu0 }
 0x342   :  { %v800_v3 = vadd.f32 %v799_v2, %v598_v0  ;;  %v801_v4 = vpop.f32.mrb[5].mxu0 }
 0x343   :  { %v802_v5 = vadd.f32 %v801_v4, %v602_v1  ;;  %v803_v6 = vpop.f32.mrb[6].mxu0 }
 0x344   :  { %v804_v7 = vadd.f32 %v803_v6, %v598_v0  ;;  %v805_v8 = vpop.f32.mrb[7].mxu0  ;;  %v808_v11 = vmax.f32 %v800_v3, 0.0 }
 0x345   :  { %v809_v9 = vmax.f32 %v802_v5, 0.0  ;;  %v806_v10 = vadd.f32 %v805_v8, %v602_v1  ;;  %v2306_v8 = vld [vmem:[#allocation14 + $0x2c] ss:$16 sps:$4 sm:$0xff]  }
 0x346   :  { %v810_v12 = vmax.f32 %v804_v7, 0.0  ;;  %v2842_v20 = vadd.f32 %v808_v11, %v300_v32  ;;  %v2300_v32 = vld [vmem:[#allocation14 + $0xc] ss:$16 sps:$4 sm:$0xff]   ;;  %v2298_v7 = vld [vmem:[#allocation14 + $0x8] ss:$16 sps:$4 sm:$0xff]  }
 0x347   :  { %v811_v13 = vmax.f32 %v806_v10, 0.0  ;;  %v2834_v17 = vadd.f32 %v809_v9, %v301_v30  ;;  %v2294_v30 = vld [vmem:[#allocation13 + $0xf4] ss:$8 sps:$4 sm:$0xff]   ;;  %v2304_v9 = vld [vmem:[#allocation14 + $0x28] ss:$16 sps:$4 sm:$0xff]  }
 0x348   :  { %v2830_v14 = vadd.f32 %v810_v12, %v302_v29  ;;  %v2291_v29 = vld [vmem:[#allocation13 + $0xe4] ss:$8 sps:$4 sm:$0xff]   ;;  %v2310_v11 = vld [vmem:[#allocation14 + $0x48] ss:$16 sps:$4 sm:$0xff]  }
 0x349   :  { %v2838_v19 = vadd.f32 %v811_v13, %v303_v31  ;;  %1305 = vmatprep.subr.bf16.mxu0 %v2291_v29  ;;  %v2295_v31 = vld [vmem:[#allocation14] ss:$16 sps:$4 sm:$0xff]   ;;  %v2312_v10 = vld [vmem:[#allocation14 + $0x4c] ss:$16 sps:$4 sm:$0xff]   ;;  %v2316_v13 = vld [vmem:[#allocation14 + $0x68] ss:$16 sps:$4 sm:$0xff]  }
 0x34a   :  { %v816_v26 = vpack.c.bf16 %v2830_v14, %v2842_v20  ;;  %1306 = vmatpush1.bf16.msra.mxu0 %v2289_v23  ;;  %v2318_v12 = vld [vmem:[#allocation14 + $0x6c] ss:$16 sps:$4 sm:$0xff]   ;;  %v2328_v23 = vld [vmem:[#allocation14 + $0xa8] ss:$16 sps:$4 sm:$0xff]  }
 0x34b   :  { %v817_v21 = vpack.c.bf16 %v2838_v19, %v2834_v17  ;;  %1307 = vmatprep.subr.bf16.mxu0 %v2294_v30  ;;  %v2330_v29 = vld [vmem:[#allocation14 + $0xac] ss:$16 sps:$4 sm:$0xff]  }
 0x34c   :  { %v2336_v30 = vld [vmem:[#allocation14 + $0xcc] ss:$16 sps:$4 sm:$0xff]  }
 0x34d   :  { %1055 = vmatprep.mubr.bf16.mxu1 %v817_v21  ;;  %v2324_v21 = vld [vmem:[#allocation14 + $0x8c] ss:$16 sps:$4 sm:$0xff]  }
 0x34e   :  { %1056 = vmatmul.mubr.bf16.vlgmr.msra.gmra.mrb[4].mxu1 %v816_v26  ;;  %1308 = vmatpush1.bf16.msra.mxu0 %v2292_v28  ;;  %v2322_v26 = vld [vmem:[#allocation14 + $0x88] ss:$16 sps:$4 sm:$0xff]  }
 0x34f   :  { %1779 = vmatprep.subr.bf16.mxu0 %v2300_v32  ;;  %1737 = vmatpush1.bf16.msra.mxu1 %v2295_v31  ;;  %v2334_v28 = vld [vmem:[#allocation14 + $0xc8] ss:$16 sps:$4 sm:$0xff]   ;;  %v2342_v31 = vld [vmem:[#allocation14 + $0xec] ss:$16 sps:$4 sm:$0xff]  }
 0x350   :  { %1738 = vmatprep.subr.bf16.mxu1 %v2303_v22  ;;  %v2348_v32 = vld [vmem:[#allocation14 + $0x10c] ss:$16 sps:$4 sm:$0xff]   ;;  %v2346_v22 = vld [vmem:[#allocation14 + $0x108] ss:$16 sps:$4 sm:$0xff]  }
 0x353   :  { %1739 = vmatpush1.bf16.msra.mxu1 %v2301_v24  ;;  %v2354_v24 = vld [vmem:[#allocation14 + $0x12c] ss:$16 sps:$4 sm:$0xff]  }
 0x354   :  { %1740 = vmatprep.subr.bf16.mxu1 %v2309_v27  ;;  %v2352_v27 = vld [vmem:[#allocation14 + $0x128] ss:$16 sps:$4 sm:$0xff]  }
 0x357   :  { %1741 = vmatpush1.bf16.msra.mxu1 %v2307_v33  ;;  %v2360_v33 = vld [vmem:[#allocation14 + $0x14c] ss:$16 sps:$4 sm:$0xff]  }
 0x358   :  { %1742 = vmatprep.subr.bf16.mxu1 %v2315_v34  ;;  %v2358_v34 = vld [vmem:[#allocation14 + $0x148] ss:$16 sps:$4 sm:$0xff]  }
 0x35b   :  { %1743 = vmatpush1.bf16.msra.mxu1 %v2313_v35  ;;  %v2366_v35 = vld [vmem:[#allocation14 + $0x16c] ss:$16 sps:$4 sm:$0xff]  }
 0x35c   :  { %1744 = vmatprep.subr.bf16.mxu1 %v2321_v36  ;;  %v2364_v36 = vld [vmem:[#allocation14 + $0x168] ss:$16 sps:$4 sm:$0xff]  }
 0x35f   :  { %1745 = vmatpush1.bf16.msra.mxu1 %v2319_v37  ;;  %v2372_v37 = vld [vmem:[#allocation14 + $0x18c] ss:$16 sps:$4 sm:$0xff]  }
 0x360   :  { %1746 = vmatprep.subr.bf16.mxu1 %v2327_v38  ;;  %v2370_v38 = vld [vmem:[#allocation14 + $0x188] ss:$16 sps:$4 sm:$0xff]  }
 0x363   :  { %1747 = vmatpush1.bf16.msra.mxu1 %v2325_v39  ;;  %v2375_v39 = vld [vmem:[#allocation14 + $0x1a4] ss:$16 sps:$4 sm:$0xff]  }
 0x364   :  { %1748 = vmatprep.subr.bf16.mxu1 %v2333_v40  ;;  %v2378_v40 = vld [vmem:[#allocation14 + $0x1ac] ss:$16 sps:$4 sm:$0xff]  }
 0x367   :  { %1749 = vmatpush1.bf16.msra.mxu1 %v2331_v41  ;;  %v2373_v41 = vld [vmem:[#allocation14 + $0x1a0] ss:$16 sps:$4 sm:$0xff]  }
 0x368   :  { %1750 = vmatprep.subr.bf16.mxu1 %v2339_v42  ;;  %v2376_v42 = vld [vmem:[#allocation14 + $0x1a8] ss:$16 sps:$4 sm:$0xff]  }
 0x36b   :  { %1751 = vmatpush1.bf16.msra.mxu1 %v2337_v43  ;;  %v2381_v43 = vld [vmem:[#allocation14 + $0x1c4] ss:$16 sps:$4 sm:$0xff]  }
 0x36c   :  { %1752 = vmatprep.subr.bf16.mxu1 %v2345_v44  ;;  %v2384_v44 = vld [vmem:[#allocation14 + $0x1cc] ss:$16 sps:$4 sm:$0xff]  }
 0x36f   :  { %1753 = vmatpush1.bf16.msra.mxu1 %v2343_v45  ;;  %v2379_v45 = vld [vmem:[#allocation14 + $0x1c0] ss:$16 sps:$4 sm:$0xff]  }
 0x370   :  { %1754 = vmatprep.subr.bf16.mxu1 %v2351_v46  ;;  %v2382_v46 = vld [vmem:[#allocation14 + $0x1c8] ss:$16 sps:$4 sm:$0xff]  }
 0x373   :  { %1755 = vmatpush1.bf16.msra.mxu1 %v2349_v47  ;;  %v2387_v47 = vld [vmem:[#allocation14 + $0x1e4] ss:$16 sps:$4 sm:$0xff]  }
 0x374   :  { %1756 = vmatprep.subr.bf16.mxu1 %v2357_v48  ;;  %v2390_v48 = vld [vmem:[#allocation14 + $0x1ec] ss:$16 sps:$4 sm:$0xff]  }
 0x377   :  { %1757 = vmatpush1.bf16.msra.mxu1 %v2355_v49  ;;  %v2385_v49 = vld [vmem:[#allocation14 + $0x1e0] ss:$16 sps:$4 sm:$0xff]  }
 0x378   :  { %1758 = vmatprep.subr.bf16.mxu1 %v2363_v50  ;;  %v2388_v50 = vld [vmem:[#allocation14 + $0x1e8] ss:$16 sps:$4 sm:$0xff]  }
 0x37b   :  { %1759 = vmatpush1.bf16.msra.mxu1 %v2361_v51  ;;  %v1105_v51 = vld [vmem:[#allocation7 + $0x4] ss:$8 sm:$0x3] }
 0x37c   :  { %1760 = vmatprep.subr.bf16.mxu1 %v2369_v52  ;;  %v1110_v52 = vrot.slane %v1105_v51, %v2800_v18 }
 0x37f   :  { %1761 = vmatpush1.bf16.msra.mxu1 %v2367_v53  ;;  %v1114_v53 = vrot.slane %v1105_v51, %v2797_v16 }
 0x380   :  { %1762 = vmatprep.subr.bf16.mxu1 %v2375_v39 }
 0x383   :  { %1763 = vmatpush1.bf16.msra.mxu1 %v2373_v41 }
 0x384   :  { %1764 = vmatprep.subr.bf16.mxu1 %v2381_v43 }
 0x387   :  { %1765 = vmatpush1.bf16.msra.mxu1 %v2379_v45 }
 0x388   :  { %1766 = vmatprep.subr.bf16.mxu1 %v2387_v47 }
 0x38b   :  { %1767 = vmatpush1.bf16.msra.mxu1 %v2385_v49 }
 0x421   :  { %v1057_v57 = vpop.f32.mrb[4].mxu1 }
 0x422   :  { %v1058_v58 = vadd.f32 %v1057_v57, %v856_v55  ;;  %v1059_v59 = vpop.f32.mrb[5].mxu1 }
 0x423   :  { %v1060_v60 = vadd.f32 %v1059_v59, %v860_v56  ;;  %v1061_v61 = vpop.f32.mrb[6].mxu1 }
 0x424   :  { %v1062_v62 = vadd.f32 %v1061_v61, %v856_v55  ;;  %v1063_v63 = vpop.f32.mrb[7].mxu1  ;;  %v1066_v1 = vmax.f32 %v1058_v58, 0.0 }
 0x425   :  { %v1064_v0 = vadd.f32 %v1063_v63, %v860_v56  ;;  %v1067_v3 = vmax.f32 %v1060_v60, 0.0 }
 0x426   :  { %v1068_v2 = vmax.f32 %v1062_v62, 0.0 }
 0x427   :  { %v1069_v4 = vmax.f32 %v1064_v0, 0.0 }
 0x428   :  { %v1070_v5 = vpack.c.bf16 %v1068_v2, %v1066_v1 }
 0x429   :  { %v1071_v6 = vpack.c.bf16 %v1069_v4, %v1067_v3 }
 0x42b   :  { %1309 = vmatprep.mubr.bf16.mxu0 %v1071_v6 }
 0x42c   :  { %1310 = vmatmul.mubr.bf16.vlgmr.msra.gmra.mrb[8].mxu0 %v1070_v5 }
 0x42d   :  { %1780 = vmatpush1.bf16.msra.mxu0 %v2298_v7 }
 0x42e   :  { %1781 = vmatprep.subr.bf16.mxu0 %v2306_v8  ;;  %v1406_v8 = vsub.s32 2, %v2794_v15 }
 0x431   :  { %1782 = vmatpush1.bf16.msra.mxu0 %v2304_v9  ;;  %v1394_v9 = vld [vmem:[%s2883_s8] sm:$0xf]  ;;  %s2567_s8 = scalar_lea.vmem %s1836_s17, 1024 }
 0x432   :  { %1783 = vmatprep.subr.bf16.mxu0 %v2312_v10  ;;  %v1407_v10 = vrot.slane %v1394_v9, %v1406_v8  ;;  %p2568_p8 = scmp.ne.s32.totalorder %s1836_s17, %s2567_s8  ;;  %p2573_p10 = scmp.lt.s32.totalorder %s2567_s8, %s2567_s8 }
 0x434   :  { %p2574_p11 = por %p2573_p10, %p2572_p9 }
 0x435   :  { %1784 = vmatpush1.bf16.msra.mxu0 %v2310_v11 }
 0x436   :  { %1785 = vmatprep.subr.bf16.mxu0 %v2318_v12  ;;  %p2575_p12 = pnand %p2574_p11, %p2568_p8 }
 0x439   :  { %1786 = vmatpush1.bf16.msra.mxu0 %v2316_v13 }
 0x43a   :  { %1787 = vmatprep.subr.bf16.mxu0 %v2324_v21 }
 0x43d   :  { %1788 = vmatpush1.bf16.msra.mxu0 %v2322_v26 }
 0x43e   :  { %1789 = vmatprep.subr.bf16.mxu0 %v2330_v29 }
 0x441   :  { %1790 = vmatpush1.bf16.msra.mxu0 %v2328_v23 }
 0x442   :  { %1791 = vmatprep.subr.bf16.mxu0 %v2336_v30 }
 0x445   :  { %1792 = vmatpush1.bf16.msra.mxu0 %v2334_v28 }
 0x446   :  { %1793 = vmatprep.subr.bf16.mxu0 %v2342_v31 }
 0x449   :  { %1794 = vmatpush1.bf16.msra.mxu0 %v2340_v25 }
 0x44a   :  { %1795 = vmatprep.subr.bf16.mxu0 %v2348_v32 }
 0x44d   :  { %1796 = vmatpush1.bf16.msra.mxu0 %v2346_v22 }
 0x44e   :  { %1797 = vmatprep.subr.bf16.mxu0 %v2354_v24 }
 0x451   :  { %1798 = vmatpush1.bf16.msra.mxu0 %v2352_v27 }
 0x452   :  { %1799 = vmatprep.subr.bf16.mxu0 %v2360_v33 }
 0x455   :  { %1800 = vmatpush1.bf16.msra.mxu0 %v2358_v34 }
 0x456   :  { %1801 = vmatprep.subr.bf16.mxu0 %v2366_v35 }
 0x459   :  { %1802 = vmatpush1.bf16.msra.mxu0 %v2364_v36 }
 0x45a   :  { %1803 = vmatprep.subr.bf16.mxu0 %v2372_v37 }
 0x45d   :  { %1804 = vmatpush1.bf16.msra.mxu0 %v2370_v38 }
 0x45e   :  { %1805 = vmatprep.subr.bf16.mxu0 %v2378_v40 }
 0x461   :  { %1806 = vmatpush1.bf16.msra.mxu0 %v2376_v42 }
 0x462   :  { %1807 = vmatprep.subr.bf16.mxu0 %v2384_v44 }
 0x465   :  { %1808 = vmatpush1.bf16.msra.mxu0 %v2382_v46 }
 0x466   :  { %1809 = vmatprep.subr.bf16.mxu0 %v2390_v48 }
 0x469   :  { %1810 = vmatpush1.bf16.msra.mxu0 %v2388_v50 }
 0x4ff   :  { %v1311_v54 = vpop.f32.mrb[8].mxu0 }
 0x500   :  { %v1312_v55 = vadd.f32 %v1311_v54, %v1110_v52  ;;  %v1313_v56 = vpop.f32.mrb[9].mxu0 }
 0x501   :  { %v1314_v57 = vadd.f32 %v1313_v56, %v1114_v53  ;;  %v1315_v58 = vpop.f32.mrb[10].mxu0 }
 0x502   :  { %v1320_v59 = vmax.f32 %v1312_v55, 0.0  ;;  %v1316_v60 = vadd.f32 %v1315_v58, %v1110_v52  ;;  %v1317_v61 = vpop.f32.mrb[11].mxu0 }
 0x503   :  { %v1321_v62 = vmax.f32 %v1314_v57, 0.0  ;;  %v1318_v63 = vadd.f32 %v1317_v61, %v1114_v53 }
 0x504   :  { %v1322_v0 = vmax.f32 %v1316_v60, 0.0  ;;  %v1324_v2 = vadd.f32 %v1320_v59, %v2842_v20  ;;  %v1410_v20 = vsub.s32 3, %v2794_v15 }
 0x505   :  { %v1323_v1 = vmax.f32 %v1318_v63, 0.0  ;;  %v1325_v4 = vadd.f32 %v1321_v62, %v2834_v17  ;;  %v1403_v17 = vrot.slane %v1394_v9, %v2797_v16 }
 0x506   :  { %v1326_v3 = vadd.f32 %v1322_v0, %v2830_v14  ;;  %v1399_v14 = vrot.slane %v1394_v9, %v2800_v18 }
 0x507   :  { %v1327_v5 = vadd.f32 %v1323_v1, %v2838_v19  ;;  %v1411_v19 = vrot.slane %v1394_v9, %v1410_v20 }
 0x508   :  { %v1328_v6 = vpack.c.bf16 %v1326_v3, %v1324_v2 }
 0x509   :  { %v1329_v7 = vpack.c.bf16 %v1327_v5, %v1325_v4 }
 0x50b   :  { %1768 = vmatprep.mubr.bf16.mxu1 %v1329_v7  ;;  %1811 = vmatprep.mubr.bf16.mxu0 %v1329_v7 }
 0x50c   :  { %1769 = vmatmul.mubr.bf16.vlgmr.msra.gmra.mrb[8].mxu1 %v1328_v6  ;;  %1812 = vmatmul.mubr.bf16.vlgmr.msra.gmra.mrb[12].mxu0 %v1328_v6 }
 0x5df   :  { %v1770_v11 = vpop.f32.mrb[8].mxu1  ;;  %v1813_v12 = vpop.f32.mrb[12].mxu0 }
 0x5e0   :  { %v1771_v13 = vadd.f32 %v1770_v11, %v1399_v14  ;;  %v1814_v21 = vadd.f32 %v1813_v12, %v1407_v10  ;;  %v1772_v26 = vpop.f32.mrb[9].mxu1  ;;  %v1815_v29 = vpop.f32.mrb[13].mxu0 }
 0x5e1   :  { %v1773_v23 = vadd.f32 %v1772_v26, %v1403_v17  ;;  %v1816_v30 = vadd.f32 %v1815_v29, %v1411_v19  ;;  %v1774_v28 = vpop.f32.mrb[10].mxu1  ;;  %v1817_v31 = vpop.f32.mrb[14].mxu0 }
 0x5e2   :  { %1822 = vst [vmem:[#allocation16] sm:$0xff] %v1771_v13  ;;  %1824 = vst [vmem:[#allocation16 + $0x10] sm:$0xff] %v1814_v21  ;;  %v1775_v15 = vadd.f32 %v1774_v28, %v1399_v14  ;;  %v1818_v18 = vadd.f32 %v1817_v31, %v1407_v10  ;;  %v1776_v25 = vpop.f32.mrb[11].mxu1  ;;  %v1819_v32 = vpop.f32.mrb[15].mxu0 }
 0x5e3   :  { %1823 = vst [vmem:[#allocation16 + $0x8] sm:$0xff] %v1773_v23  ;;  %1825 = vst [vmem:[#allocation16 + $0x18] sm:$0xff] %v1816_v30  ;;  %v1777_v16 = vadd.f32 %v1776_v25, %v1403_v17  ;;  %v1820_v22 = vadd.f32 %v1819_v32, %v1411_v19 }
 0x5e4   :  { %1826 = vst [vmem:[#allocation16 + $0x20] sm:$0xff] %v1775_v15  ;;  %1828 = vst [vmem:[#allocation16 + $0x30] sm:$0xff] %v1818_v18 }
 0x5e5   :  { %1827 = vst [vmem:[#allocation16 + $0x28] sm:$0xff] %v1777_v16  ;;  %1829 = vst [vmem:[#allocation16 + $0x38] sm:$0xff] %v1820_v22 }
 0x5e6   :  { %2578 = shalt.err (!%p2575_p12)
}
 0x5e7   :  { %s2579_s23 = scalar_lea.hbm %s2884_s9, 1024 }
 0x5e8   :  { %p2580_p13 = scmp.ne.s32.totalorder %s2884_s9, %s2579_s23  ;;  %p2583_p0 = scmp.lt.u32.totalorder %s2579_s23, %s2884_s9 }
 0x5ea   :  { %p2585_p1 = pnand %p2583_p0, %p2580_p13 }
 0x5ec   :  { %2588 = shalt.err (!%p2585_p1)
}
 0x5ed   :  { %s2617_s29 = smov 512   ;;  %s2618_s30 = smov 32  }
 0x5ee   :  { %1841 = dma.vmem_to_hbm [thread:$0]  %s1836_s17, 1024, %s2884_s9, [#allocation4], %s2617_s29, %s2617_s29, %s2618_s30  }
 0x5ef   :  { %2599 = dma.done.wait [#allocation4], 1024  }
 0x5f0   :  { %2600 = vsyncadd [#allocation4], 4294966272 }
 0x5f1   :  { %1845 = vsyncpa [#allocation3], 1 }
 0x5f2   :  { %1846 = vsyncpa [#allocation6], 1 }
 0x5f3   :  { %1847 = vsyncpa [#allocation9], 1 }
 0x5f4   :  { %1848 = vsyncpa [#allocation12], 1 }
 0x5f5   :  { %1849 = vsyncpa [#allocation15], 1 }
 0x5f6   :  { %1850 = vsyncpa [#allocation4], 1 }

</bundles_post_ra>
